<compile_context>
chip_gen: v7x
topology: tpu7x:2x2x1
jax: 0.10.0
libtpu: 0.0.40
codegen_flags: <defaults>
</compile_context>

<pallas_src>
import functools

import numpy as np

import jax
import jax.numpy as jnp
from jax import lax
from jax.experimental import pallas as pl
from jax.experimental.pallas import tpu as pltpu

LANE = 128                      # lane-dense channel tile (multiple of 128)
COMPUTE_DTYPE = jnp.bfloat16    # MXU input dtype; accumulation stays f32


def _round_up(x, m):
    return (x + m - 1) // m * m


def _pad_channels(c):
    """Lane-dense (128) padding for big channel counts; sublane-multiple (8) padding
    for the small-channel path (stem / first decoder conv / demo shapes)."""
    return _round_up(c, LANE) if c >= LANE else _round_up(c, 8)


def _default_vmem_limit():
    # ~3/4 of physical VMEM per core: ~96 MiB on v5e/v6e (128 MiB physical), 48 MiB on
    # v7x (64 MiB physical).  Capped at 112 MiB; falls back to the v7x-safe 48 MiB.
    try:
        cap = int(pltpu.get_tpu_info().vmem_capacity_bytes)
        return int(min(cap * 3 // 4, 112 * 1024 * 1024))
    except Exception:
        return 48 * 1024 * 1024


def _conv_bn_relu_kernel(x_ref, w_ref, sb_ref, o_ref, *scratch,
                         apply_relu, n_cin_tiles, taps_per_matmul):
    # x_ref   : (1, H, W, CT)        bf16   current Cin tile of one image
    # w_ref   : (3, 3, CT, COT)      bf16
    # sb_ref  : (2, COT)             f32    row0 = folded BN scale, row1 = bias
    # o_ref   : (1, H, W, COT)       out dtype (bf16 by default)
    # scratch : [acc (H*W, COT) f32 if n_cin_tiles > 1], xpad (H+2, Wp, CT) bf16
    if n_cin_tiles > 1:
        acc_ref, xpad_ref = scratch
    else:
        (xpad_ref,) = scratch
        acc_ref = None

    ci = pl.program_id(2)
    H = o_ref.shape[1]
    W = o_ref.shape[2]
    ct = x_ref.shape[3]
    cot = o_ref.shape[3]
    Wp = xpad_ref.shape[1]

    # Zero only the halo border strips, once per Cin-reduction group: the interior is
    # fully overwritten below on every step and the border is never written elsewhere
    # (replaces the previous full-buffer memset every grid step).
    @pl.when(ci == 0)
    def _():
        zrow = jnp.zeros((1, Wp, ct), xpad_ref.dtype)
        xpad_ref[0:1, :, :] = zrow
        xpad_ref[H + 1:H + 2, :, :] = zrow
        xpad_ref[:, 0:1, :] = jnp.zeros((H + 2, 1, ct), xpad_ref.dtype)
        xpad_ref[:, W + 1:Wp, :] = jnp.zeros((H + 2, Wp - W - 1, ct), xpad_ref.dtype)

    # Current Cin tile of the image; 1-pixel halo around it stays zero.
    xpad_ref[1:H + 1, 1:W + 1, :] = x_ref[0]

    xp = xpad_ref[...]
    # Three W-shifted views (sublane relayouts), reused across the 3 kh taps; the kh
    # shifts below are cheap leading-dim slices.
    cols = [xp[:, kw:kw + W, :] for kw in range(3)]

    f32 = jnp.float32
    if taps_per_matmul == 9:
        # Small-Cin path: pack all 9 taps into one matmul, K = 9 * ct (still small).
        lhs = jnp.concatenate(
            [cols[kw][kh:kh + H] for kh in range(3) for kw in range(3)],
            axis=-1).reshape(H * W, 9 * ct)
        step = jnp.dot(lhs, w_ref[...].reshape(9 * ct, cot),
                       preferred_element_type=f32)
    elif taps_per_matmul == 3:
        # v6e/v7x path: 3 matmuls with K = 3 * ct (over-fills the 256-deep MXU) and
        # only a 3-piece lane concat per matmul (no full 9x slab materialization).
        step = None
        for kh in range(3):
            lhs = jnp.concatenate([cols[kw][kh:kh + H] for kw in range(3)],
                                  axis=-1).reshape(H * W, 3 * ct)
            mm = jnp.dot(lhs, w_ref[kh].reshape(3 * ct, cot),
                         preferred_element_type=f32)
            step = mm if step is None else step + mm
    else:
        # v5e path: 9 native K = ct matmuls, no concat at all.
        step = None
        for kh in range(3):
            for kw in range(3):
                lhs = cols[kw][kh:kh + H].reshape(H * W, ct)
                mm = jnp.dot(lhs, w_ref[kh, kw], preferred_element_type=f32)
                step = mm if step is None else step + mm

    scale = sb_ref[0:1, :]                                        # (1, COT)
    bias = sb_ref[1:2, :]                                         # (1, COT)

    def _finish(acc):
        y = acc * scale + bias
        if apply_relu:
            y = jnp.maximum(y, 0.0)
        o_ref[0] = y.reshape(H, W, cot).astype(o_ref.dtype)

    if n_cin_tiles == 1:
        # Single Cin tile: no accumulator scratch round trip, no zero-init.
        _finish(step)
    else:
        @pl.when(ci == 0)
        def _():
            acc_ref[...] = step                                   # init (no memset)

        @pl.when(ci > 0)
        def _():
            acc_ref[...] = acc_ref[...] + step

        @pl.when(ci == n_cin_tiles - 1)
        def _():
            _finish(acc_ref[...])


def conv3x3_bn_relu(x, w, scale, bias, *, apply_relu=True, out_dtype=COMPUTE_DTYPE,
                    cout_tile=None, taps_per_matmul=3):
    """Fused 3x3 conv (stride 1, pad 1, no conv bias) + folded BatchNorm + ReLU.

    x     : (N, H, W, Cin_p) NHWC activations (cast to bf16); Cin_p is either a
            multiple of 128, or < 128 and a multiple of 8 (small-Cin path).
    w     : (3, 3, Cin_p, Cout_p) HWIO weights (padded channels zero).
    scale : (Cout_p,) f32 folded BN scale;  bias : (Cout_p,) f32 folded BN bias.
    Returns (N, H, W, Cout_p) in `out_dtype` (bf16 default, so it feeds the next layer
    with no extra cast pass); padded output channels stay exactly zero.

    cout_tile: None = auto (256 if Cout_p % 256 == 0, else 128, else full width); pass
    128 on v5e.  taps_per_matmul: 3 = per-kh K=3*Cin_t matmuls (v6e/v7x), 1 = nine
    K=Cin_t matmuls (v5e).  Small-Cin layers always use the packed K=9*Cin matmul.
    """
    N, H, W, cin_p = x.shape
    cout_p = w.shape[3]
    assert w.shape[:3] == (3, 3, cin_p)
    assert taps_per_matmul in (1, 3)

    x = x.astype(COMPUTE_DTYPE)
    w = w.astype(COMPUTE_DTYPE)

    if cin_p >= LANE:
        assert cin_p % LANE == 0, "large Cin must be lane-dense (multiple of 128)"
        cin_t = LANE
    else:
        assert cin_p % 8 == 0, "small Cin must be padded to a multiple of 8"
        cin_t = cin_p
        taps_per_matmul = 9         # pack kh*kw*Cin into K instead of padding to 128
    n_ci = cin_p // cin_t

    if cout_tile is None:
        if cout_p % 256 == 0:
            cout_tile = 256
        elif cout_p % LANE == 0:
            cout_tile = LANE
        else:
            cout_tile = cout_p
    assert cout_p % cout_tile == 0
    n_co = cout_p // cout_tile

    Wp = _round_up(W + 2, 8)        # halo scratch, right-padded to a sublane multiple
    sb = jnp.stack([scale, bias], axis=0).astype(jnp.float32)     # (2, Cout_p)

    kernel = functools.partial(_conv_bn_relu_kernel, apply_relu=apply_relu,
                               n_cin_tiles=n_ci, taps_per_matmul=taps_per_matmul)

    scratch = []
    if n_ci > 1:
        scratch.append(pltpu.VMEM((H * W, cout_tile), jnp.float32))   # f32 accumulator
    scratch.append(pltpu.VMEM((H + 2, Wp, cin_t), COMPUTE_DTYPE))     # halo buffer

    out_itemsize = np.dtype(out_dtype).itemsize
    cost = pl.CostEstimate(
        flops=2 * N * H * W * 9 * cin_p * cout_p,
        transcendentals=0,
        bytes_accessed=(x.size * x.dtype.itemsize * n_co    # x re-read per Cout tile
                        + w.size * w.dtype.itemsize
                        + sb.size * 4
                        + N * H * W * cout_p * out_itemsize))

    return pl.pallas_call(
        kernel,
        out_shape=jax.ShapeDtypeStruct((N, H, W, cout_p), out_dtype),
        grid_spec=pltpu.PrefetchScalarGridSpec(
            num_scalar_prefetch=0,
            grid=(N, n_co, n_ci),
            in_specs=[
                pl.BlockSpec((1, H, W, cin_t), lambda n, co, ci: (n, 0, 0, ci)),
                pl.BlockSpec((3, 3, cin_t, cout_tile),
                             lambda n, co, ci: (0, 0, ci, co)),
                pl.BlockSpec((2, cout_tile), lambda n, co, ci: (0, co)),
            ],
            out_specs=pl.BlockSpec((1, H, W, cout_tile),
                                   lambda n, co, ci: (n, 0, 0, co)),
            scratch_shapes=scratch,
        ),
        compiler_params=pltpu.CompilerParams(
            dimension_semantics=("parallel", "parallel", "arbitrary"),
            vmem_limit_bytes=_default_vmem_limit(),
        ),
        cost_estimate=cost,
    )(x, w, sb)


def fold_bn(gamma, beta, mean, var, eps=1e-5):
    scale = gamma * lax.rsqrt(var + eps)
    bias = beta - mean * scale
    return scale, bias


def prep_conv_bn(w_hwio, gamma, beta, mean, var, cin_p, cout_p, eps=1e-5):
    """Pad a ConvBn2d layer's params to the kernel's channel counts; cast weights bf16."""
    _, _, cin, cout = w_hwio.shape
    scale, bias = fold_bn(gamma, beta, mean, var, eps)
    w_p = jnp.pad(w_hwio, ((0, 0), (0, 0), (0, cin_p - cin), (0, cout_p - cout)))
    scale_p = jnp.pad(scale, (0, cout_p - cout))
    bias_p = jnp.pad(bias, (0, cout_p - cout))
    return w_p.astype(COMPUTE_DTYPE), scale_p, bias_p


if __name__ == "__main__":
    # ---- Test 1: Decoder-style stack of two ConvBn2d(3x3, pad=1)+ReLU layers on a
    # (2, 4, 16, 16) NCHW input (exercises the small-Cin / small-Cout kernel path). ----
    N, CIN, H, W = 2, 4, 16, 16
    C1, C2 = 8, 8

    key = jax.random.PRNGKey(0)
    ks = jax.random.split(key, 9)

    x_nchw = jax.random.normal(ks[0], (N, CIN, H, W), dtype=jnp.float32)

    def conv_init(k, cin, cout):
        bound = 1.0 / (cin * 9) ** 0.5
        return jax.random.uniform(k, (3, 3, cin, cout), minval=-bound,
                                  maxval=bound, dtype=jnp.float32)

    def bn_init(k, c):
        k1, k2, k3, k4 = jax.random.split(k, 4)
        gamma = jax.random.uniform(k1, (c,), minval=0.5, maxval=1.5)
        beta = 0.1 * jax.random.normal(k2, (c,))
        mean = 0.1 * jax.random.normal(k3, (c,))
        var = jax.random.uniform(k4, (c,), minval=0.5, maxval=1.5)
        return gamma, beta, mean, var

    w1, bn1 = conv_init(ks[1], CIN, C1), bn_init(ks[2], C1)
    w2, bn2 = conv_init(ks[3], C1, C2), bn_init(ks[4], C2)

    cin_p = _pad_channels(CIN)   # 8  (small-Cin path: no 4 -> 128 blow-up)
    c1_p = _pad_channels(C1)     # 8
    c2_p = _pad_channels(C2)     # 8

    w1p, s1p, b1p = prep_conv_bn(w1, *bn1, cin_p, c1_p)
    w2p, s2p, b2p = prep_conv_bn(w2, *bn2, c1_p, c2_p)

    # Pallas path: one transpose + one channel pad at the boundary; lane-dense NHWC
    # bf16 in between (kernel emits bf16, so no inter-layer cast pass).
    @jax.jit
    def pallas_forward(x):
        h = jnp.transpose(x, (0, 2, 3, 1)).astype(COMPUTE_DTYPE)
        h = jnp.pad(h, ((0, 0), (0, 0), (0, 0), (0, cin_p - CIN)))
        h = conv3x3_bn_relu(h, w1p, s1p, b1p)
        h = conv3x3_bn_relu(h, w2p, s2p, b2p)
        return jnp.transpose(h[..., :C2], (0, 3, 1, 2)).astype(jnp.float32)

    out = jax.block_until_ready(pallas_forward(x_nchw))

    # Reference: XLA f32 convs on the same bf16-rounded activations / weights.
    def ref_layer(x_nhwc_f32, w, gamma, beta, mean, var, eps=1e-5):
        scale, bias = fold_bn(gamma, beta, mean, var, eps)
        y = lax.conv_general_dilated(
            x_nhwc_f32, w.astype(COMPUTE_DTYPE).astype(jnp.float32),
            window_strides=(1, 1), padding=((1, 1), (1, 1)),
            dimension_numbers=("NHWC", "HWIO", "NHWC"),
            precision=lax.Precision.HIGHEST)
        y = y * scale[None, None, None, :] + bias[None, None, None, :]
        return jnp.maximum(y, 0.0)

    x_ref = jnp.transpose(x_nchw, (0, 2, 3, 1)).astype(COMPUTE_DTYPE)
    x_ref = x_ref.astype(jnp.float32)
    r = ref_layer(x_ref, w1, *bn1)
    r = ref_layer(r.astype(COMPUTE_DTYPE).astype(jnp.float32), w2, *bn2)
    ref_nchw = jnp.transpose(r, (0, 3, 1, 2))

    assert out.shape == (N, C2, H, W)
    err1 = float(jnp.max(jnp.abs(out - ref_nchw)))
    assert jnp.allclose(out, ref_nchw, atol=2e-2, rtol=2e-2), err1

    # ---- Test 2: one wide-channel layer (center/decoder-style channel counts, small
    # spatial) exercising the lane-dense multi-Cin-tile reduction with a 256-wide Cout
    # tile and per-kh K=3*128 matmuls. ----
    N2, H2, W2, CIN2, COUT2 = 1, 8, 8, 256, 256
    kw_, kb_, kx_ = jax.random.split(ks[5], 3)
    w3 = conv_init(kw_, CIN2, COUT2)
    bn3 = bn_init(kb_, COUT2)
    x2 = jax.random.normal(kx_, (N2, H2, W2, CIN2), dtype=jnp.float32)

    w3p, s3p, b3p = prep_conv_bn(w3, *bn3, CIN2, COUT2)

    out2 = jax.block_until_ready(
        jax.jit(lambda a: conv3x3_bn_relu(a.astype(COMPUTE_DTYPE),
                                          w3p, s3p, b3p))(x2))
    ref2 = ref_layer(x2.astype(COMPUTE_DTYPE).astype(jnp.float32), w3, *bn3)
    err2 = float(jnp.max(jnp.abs(out2.astype(jnp.float32) - ref2)))
    assert out2.shape == (N2, H2, W2, COUT2)
    assert jnp.allclose(out2.astype(jnp.float32), ref2, atol=5e-2, rtol=2e-2), err2

    print("KERNEL_OK")
</pallas_src>

<mosaic_0001>
module attributes {stable_mosaic.version = 11 : i64} {
  func.func @_conv_bn_relu_kernel(%arg0: i32, %arg1: i32, %arg2: i32, %arg3: memref<1x16x16x8xbf16, #tpu.memory_space<vmem>>, %arg4: memref<3x3x8x8xbf16, #tpu.memory_space<vmem>>, %arg5: memref<2x8xf32, #tpu.memory_space<vmem>>, %arg6: memref<1x16x16x8xbf16, #tpu.memory_space<vmem>>, %arg7: memref<18x24x8xbf16, #tpu.memory_space<vmem>>) attributes {dimension_semantics = [#tpu.dimension_semantics<parallel>, #tpu.dimension_semantics<parallel>, #tpu.dimension_semantics<arbitrary>], iteration_bounds = array<i64: 2, 1, 1>, scalar_prefetch = 0 : i64, scratch_operands = 1 : i64, tpu.core_type = #tpu.core_type<tc>, window_params = [{transform_indices = @transform_0, window_bounds = array<i64: 1, 16, 16, 8>}, {transform_indices = @transform_1, window_bounds = array<i64: 3, 3, 8, 8>}, {transform_indices = @transform_2, window_bounds = array<i64: 2, 8>}, {transform_indices = @transform_3, window_bounds = array<i64: 1, 16, 16, 8>}]} {
    %c0_i32 = arith.constant 0 : i32
    %0 = arith.cmpi eq, %arg2, %c0_i32 : i32
    %1 = arith.extui %0 : i1 to i32
    %c0_i32_0 = arith.constant 0 : i32
    %2 = arith.cmpi ne, %1, %c0_i32_0 : i32
    scf.if %2 {
      %cst_22 = arith.constant 0.000000e+00 : bf16
      %37 = vector.broadcast %cst_22 : bf16 to vector<1x24x8xbf16>
      %c0_23 = arith.constant 0 : index
      %c0_24 = arith.constant 0 : index
      %c0_25 = arith.constant 0 : index
      %38 = vector.load %arg7[%c0_23, %c0_24, %c0_25] : memref<18x24x8xbf16, #tpu.memory_space<vmem>>, vector<1x24x8xbf16>
      tpu.vector_store %arg7[%c0_23, %c0_24, %c0_25], %37 {strides = array<i32>} : memref<18x24x8xbf16, #tpu.memory_space<vmem>>, vector<1x24x8xbf16>,
      %c17 = arith.constant 17 : index
      %c0_26 = arith.constant 0 : index
      %c0_27 = arith.constant 0 : index
      %39 = vector.load %arg7[%c17, %c0_26, %c0_27] : memref<18x24x8xbf16, #tpu.memory_space<vmem>>, vector<1x24x8xbf16>
      tpu.vector_store %arg7[%c17, %c0_26, %c0_27], %37 {strides = array<i32>} : memref<18x24x8xbf16, #tpu.memory_space<vmem>>, vector<1x24x8xbf16>,
      %cst_28 = arith.constant 0.000000e+00 : bf16
      %40 = vector.broadcast %cst_28 : bf16 to vector<18x1x8xbf16>
      %c0_29 = arith.constant 0 : index
      %c0_30 = arith.constant 0 : index
      %c0_31 = arith.constant 0 : index
      %41 = vector.load %arg7[%c0_29, %c0_30, %c0_31] : memref<18x24x8xbf16, #tpu.memory_space<vmem>>, vector<18x1x8xbf16>
      tpu.vector_store %arg7[%c0_29, %c0_30, %c0_31], %40 {strides = array<i32>} : memref<18x24x8xbf16, #tpu.memory_space<vmem>>, vector<18x1x8xbf16>,
      %cst_32 = arith.constant 0.000000e+00 : bf16
      %42 = vector.broadcast %cst_32 : bf16 to vector<18x7x8xbf16>
      %c0_33 = arith.constant 0 : index
      %c17_34 = arith.constant 17 : index
      %c0_35 = arith.constant 0 : index
      %43 = vector.load %arg7[%c0_33, %c17_34, %c0_35] : memref<18x24x8xbf16, #tpu.memory_space<vmem>>, vector<18x7x8xbf16>
      tpu.vector_store %arg7[%c0_33, %c17_34, %c0_35], %42 {strides = array<i32>} : memref<18x24x8xbf16, #tpu.memory_space<vmem>>, vector<18x7x8xbf16>,
    } else {
    }
    %c0 = arith.constant 0 : index
    %c0_1 = arith.constant 0 : index
    %c0_2 = arith.constant 0 : index
    %c0_3 = arith.constant 0 : index
    %3 = vector.load %arg3[%c0, %c0_1, %c0_2, %c0_3] : memref<1x16x16x8xbf16, #tpu.memory_space<vmem>>, vector<1x16x16x8xbf16>
    %4 = vector.shape_cast %3 : vector<1x16x16x8xbf16> to vector<16x16x8xbf16>
    %c1 = arith.constant 1 : index
    %c1_4 = arith.constant 1 : index
    %c0_5 = arith.constant 0 : index
    %5 = vector.load %arg7[%c1, %c1_4, %c0_5] : memref<18x24x8xbf16, #tpu.memory_space<vmem>>, vector<16x16x8xbf16>
    tpu.vector_store %arg7[%c1, %c1_4, %c0_5], %4 {strides = array<i32>} : memref<18x24x8xbf16, #tpu.memory_space<vmem>>, vector<16x16x8xbf16>,
    %c0_6 = arith.constant 0 : index
    %c0_7 = arith.constant 0 : index
    %c0_8 = arith.constant 0 : index
    %6 = vector.load %arg7[%c0_6, %c0_7, %c0_8] : memref<18x24x8xbf16, #tpu.memory_space<vmem>>, vector<18x24x8xbf16>
    %7 = vector.extract_strided_slice %6 {offsets = [0, 0, 0], sizes = [18, 16, 8], strides = [1, 1, 1]} : vector<18x24x8xbf16> to vector<18x16x8xbf16>
    %8 = vector.extract_strided_slice %6 {offsets = [0, 1, 0], sizes = [18, 16, 8], strides = [1, 1, 1]} : vector<18x24x8xbf16> to vector<18x16x8xbf16>
    %9 = vector.extract_strided_slice %6 {offsets = [0, 2, 0], sizes = [18, 16, 8], strides = [1, 1, 1]} : vector<18x24x8xbf16> to vector<18x16x8xbf16>
    %10 = vector.extract_strided_slice %7 {offsets = [0, 0, 0], sizes = [16, 16, 8], strides = [1, 1, 1]} : vector<18x16x8xbf16> to vector<16x16x8xbf16>
    %11 = vector.extract_strided_slice %8 {offsets = [0, 0, 0], sizes = [16, 16, 8], strides = [1, 1, 1]} : vector<18x16x8xbf16> to vector<16x16x8xbf16>
    %12 = vector.extract_strided_slice %9 {offsets = [0, 0, 0], sizes = [16, 16, 8], strides = [1, 1, 1]} : vector<18x16x8xbf16> to vector<16x16x8xbf16>
    %13 = vector.extract_strided_slice %7 {offsets = [1, 0, 0], sizes = [16, 16, 8], strides = [1, 1, 1]} : vector<18x16x8xbf16> to vector<16x16x8xbf16>
    %14 = vector.extract_strided_slice %8 {offsets = [1, 0, 0], sizes = [16, 16, 8], strides = [1, 1, 1]} : vector<18x16x8xbf16> to vector<16x16x8xbf16>
    %15 = vector.extract_strided_slice %9 {offsets = [1, 0, 0], sizes = [16, 16, 8], strides = [1, 1, 1]} : vector<18x16x8xbf16> to vector<16x16x8xbf16>
    %16 = vector.extract_strided_slice %7 {offsets = [2, 0, 0], sizes = [16, 16, 8], strides = [1, 1, 1]} : vector<18x16x8xbf16> to vector<16x16x8xbf16>
    %17 = vector.extract_strided_slice %8 {offsets = [2, 0, 0], sizes = [16, 16, 8], strides = [1, 1, 1]} : vector<18x16x8xbf16> to vector<16x16x8xbf16>
    %18 = vector.extract_strided_slice %9 {offsets = [2, 0, 0], sizes = [16, 16, 8], strides = [1, 1, 1]} : vector<18x16x8xbf16> to vector<16x16x8xbf16>
    %19 = tpu.concatenate %10, %11, %12, %13, %14, %15, %16, %17, %18 in 2 : vector<16x16x8xbf16>, vector<16x16x8xbf16>, vector<16x16x8xbf16>, vector<16x16x8xbf16>, vector<16x16x8xbf16>, vector<16x16x8xbf16>, vector<16x16x8xbf16>, vector<16x16x8xbf16>, vector<16x16x8xbf16> -> vector<16x16x72xbf16>
    %20 = vector.shape_cast %19 : vector<16x16x72xbf16> to vector<256x72xbf16>
    %c0_9 = arith.constant 0 : index
    %c0_10 = arith.constant 0 : index
    %c0_11 = arith.constant 0 : index
    %c0_12 = arith.constant 0 : index
    %21 = vector.load %arg4[%c0_9, %c0_10, %c0_11, %c0_12] : memref<3x3x8x8xbf16, #tpu.memory_space<vmem>>, vector<3x3x8x8xbf16>
    %22 = vector.shape_cast %21 : vector<3x3x8x8xbf16> to vector<72x8xbf16>
    %cst = arith.constant dense<0.000000e+00> : vector<256x8xf32>
    %23 = tpu.matmul %20, %22, %cst {dimension_numbers = #tpu.dot_dimension_numbers<[1], [0], [0], [1], [0, 0, 1, 1], [], []>} : vector<256x72xbf16>, vector<72x8xbf16>, vector<256x8xf32> -> vector<256x8xf32>
    %c0_13 = arith.constant 0 : index
    %c0_14 = arith.constant 0 : index
    %24 = vector.load %arg5[%c0_13, %c0_14] : memref<2x8xf32, #tpu.memory_space<vmem>>, vector<1x8xf32>
    %c1_15 = arith.constant 1 : index
    %c0_16 = arith.constant 0 : index
    %25 = vector.load %arg5[%c1_15, %c0_16] : memref<2x8xf32, #tpu.memory_space<vmem>>, vector<1x8xf32>
    %26 = vector.broadcast %24 : vector<1x8xf32> to vector<256x8xf32>
    %27 = arith.mulf %23, %26 : vector<256x8xf32>
    %28 = vector.broadcast %25 : vector<1x8xf32> to vector<256x8xf32>
    %29 = arith.addf %27, %28 : vector<256x8xf32>
    %cst_17 = arith.constant 0.000000e+00 : f32
    %30 = vector.broadcast %cst_17 : f32 to vector<256x8xf32>
    %31 = arith.maximumf %29, %30 : vector<256x8xf32>
    %32 = vector.shape_cast %31 : vector<256x8xf32> to vector<16x16x8xf32>
    %33 = arith.truncf %32 : vector<16x16x8xf32> to vector<16x16x8xbf16>
    %c0_18 = arith.constant 0 : index
    %c0_19 = arith.constant 0 : index
    %c0_20 = arith.constant 0 : index
    %c0_21 = arith.constant 0 : index
    %34 = vector.load %arg6[%c0_18, %c0_19, %c0_20, %c0_21] : memref<1x16x16x8xbf16, #tpu.memory_space<vmem>>, vector<1x16x16x8xbf16>
    %35 = vector.shape_cast %34 : vector<1x16x16x8xbf16> to vector<16x16x8xbf16>
    %36 = vector.shape_cast %33 : vector<16x16x8xbf16> to vector<1x16x16x8xbf16>
    tpu.vector_store %arg6[%c0_18, %c0_19, %c0_20, %c0_21], %36 {strides = array<i32>} : memref<1x16x16x8xbf16, #tpu.memory_space<vmem>>, vector<1x16x16x8xbf16>,
    return
  }
  func.func @transform_0(%arg0: i32, %arg1: i32, %arg2: i32) -> (i32, i32, i32, i32) {
    %c0_i32 = arith.constant 0 : i32
    %c0_i32_0 = arith.constant 0 : i32
    %c0_i32_1 = arith.constant 0 : i32
    return %arg0, %c0_i32, %c0_i32_0, %arg2 : i32, i32, i32, i32
  }
  func.func @transform_1(%arg0: i32, %arg1: i32, %arg2: i32) -> (i32, i32, i32, i32) {
    %c0_i32 = arith.constant 0 : i32
    %c0_i32_0 = arith.constant 0 : i32
    %c0_i32_1 = arith.constant 0 : i32
    return %c0_i32, %c0_i32_0, %arg2, %arg1 : i32, i32, i32, i32
  }
  func.func @transform_2(%arg0: i32, %arg1: i32, %arg2: i32) -> (i32, i32) {
    %c0_i32 = arith.constant 0 : i32
    %c0_i32_0 = arith.constant 0 : i32
    return %c0_i32, %arg1 : i32, i32
  }
  func.func @transform_3(%arg0: i32, %arg1: i32, %arg2: i32) -> (i32, i32, i32, i32) {
    %c0_i32 = arith.constant 0 : i32
    %c0_i32_0 = arith.constant 0 : i32
    %c0_i32_1 = arith.constant 0 : i32
    return %arg0, %c0_i32, %c0_i32_0, %arg1 : i32, i32, i32, i32
  }
}

</mosaic_0001>

<bundles_post_ra>
// kernel: pallas_forward.2
= control target key start
LH: loop header
LB: loop body
LE: loop exit
PB: predicated region body
PF: predicated region fallthrough
CT: control target
= control target key end

     0   :  { %s2813_s12 = smov 0   ;;  %s2815_s13 = smov 0   ;;  %s3971_s0 = inlined_call_operand.vmem [shape: bf16[2,16,16,8], index: 0, kind: input, shape index: {}]   ;;  %s3972_s1 = inlined_call_operand.vmem [shape: bf16[3,3,8,8], index: 1, kind: input, shape index: {}]   ;;  %s3973_s2 = inlined_call_operand.vmem [shape: f32[2,8], index: 2, kind: input, shape index: {}]   ;;  %s3974_s3 = inlined_call_operand.vmem [shape: bf16[2,16,16,8], index: 3, kind: output, shape index: {}]  }
   0x1   :  { %s2817_s14 = smov 0  }
   0x2 LB: > { %s32_s15 = sadd.s32 1, %s2778_s13  ;;  %p2471_p0 = scmp.ge.s32.totalorder %s2782_s14, 1  ;;  %s2782_s14 = sphi %s2817_s14, %s13_s14   ;;  %s2778_s13 = sphi %s2815_s13, %s3982_s13   ;;  %s2774_s12 = sphi %s2813_s12, %s3981_s12  }
   0x3   : > { %p34_p1 = scmp.ge.s32.totalorder %s32_s15, 2  ;;  %p186_p2 = scmp.lt.s32.totalorder %s2782_s14, 3 }
   0x5   : > { %s3984_s15 = smov (%p34_p1, %s32_s15), 0  ;;  %p187_p3 = pnand %p2471_p0, %p186_p2 }
   0x6   : > { %vm259_vm0 = vcmask (!%p187_p3), 60416   ;;  %vm267_vm1 = vcmask (!%p187_p3), 57344   ;;  %vm268_vm2 = vsmask.f32 (!%p187_p3), 256  ;;  %v2784_v0 = vmov (!%p187_p3), 0   ;;  %p227_p4 = scmp.lt.s32.totalorder (!%p187_p3), %s2774_s12, 1 }
   0x7   : > { %190 = sbr.rel (%p187_p3) target bundleno = 637 (0x27d), region = 32  ;;  %260 = vst.msk [vmem:[#allocation2] sm:$0xf] (!%p187_p3), %vm259_vm0, %v2784_v0  ;;  %261 = vst.msk [vmem:[#allocation2 + $0x4] sm:$0xf] (!%p187_p3), %vm259_vm0, %v2784_v0  ;;  %vm1262_vm7 = vcmask (!%p187_p3), 1046528  }
   0x8   : > { %262 = vst.msk [vmem:[#allocation2 + $0x8] sm:$0xf] (!%p187_p3), %vm259_vm0, %v2784_v0  ;;  %vm2835_vm3 = vmand (!%p187_p3), %vm267_vm1, %vm268_vm2  ;;  %vm325_vm4 = vsmask.f32 (!%p187_p3), 7938  ;;  %v297_v2 = vld [vmem:[#allocation2 + $0x6c] sm:$0x1] (!%p187_p3) }
   0x9   : > { %264 = vst.msk [vmem:[#allocation2 + $0xcc] sm:$0xf] (!%p187_p3), %vm259_vm0, %v2784_v0  ;;  %265 = vst.msk [vmem:[#allocation2 + $0xd0] sm:$0xf] (!%p187_p3), %vm259_vm0, %v2784_v0  ;;  %v298_v4 = vsel (!%p187_p3), %vm2835_vm3, 0, %v297_v2  ;;  %s2785_s20 = smov (!%p187_p3), 16  }
   0xa   : > { %266 = vst.msk [vmem:[#allocation2 + $0xd4] sm:$0xf] (!%p187_p3), %vm259_vm0, %v2784_v0  ;;  %vm2843_vm5 = vmand (!%p187_p3), %vm259_vm0, %vm325_vm4  ;;  %v273_v5 = vld [vmem:[#allocation2 + $0xc] sm:$0x1] (!%p187_p3)  ;;  %v300_v7 = vld [vmem:[#allocation2 + $0x78] sm:$0x1] (!%p187_p3) }
   0xb   : > { %299 = vst [vmem:[#allocation2 + $0x6c] sm:$0x1] (!%p187_p3), %v298_v4  ;;  %v274_v6 = vsel (!%p187_p3), %vm2835_vm3, 0, %v273_v5  ;;  %v276_v8 = vld [vmem:[#allocation2 + $0x18] sm:$0x1] (!%p187_p3)  ;;  %v301_v9 = vsel (!%p187_p3), %vm2835_vm3, 0, %v300_v7 }
   0xc   : > { %275 = vst [vmem:[#allocation2 + $0xc] sm:$0x1] (!%p187_p3), %v274_v6  ;;  %v277_v10 = vsel (!%p187_p3), %vm2835_vm3, 0, %v276_v8  ;;  %v294_v11 = vld [vmem:[#allocation2 + $0x60] sm:$0x1] (!%p187_p3)  ;;  %s2786_s21 = smov (!%p187_p3), 24  }
   0xd   : > { %v351_v12 = vld [vmem:[#allocation2 + $0x68] sm:$0xf] (!%p187_p3)  ;;  %302 = vst [vmem:[#allocation2 + $0x78] sm:$0x1] (!%p187_p3), %v301_v9  ;;  %278 = vst [vmem:[#allocation2 + $0x18] sm:$0x1] (!%p187_p3), %v277_v10 }
   0xe   : > { %s3986_s12 = smov (!%p227_p4, %s2774_s12), 1  ;;  %v295_v13 = vsel %vm2835_vm3, 0, %v294_v11  ;;  %v352_v14 = vsel %vm2843_vm5, 0, %v351_v12  ;;  %vm414_vm6 = vsmask.f32 4368  ;;  %s2787_s22 = smov 8  }
   0xf   : > { %s2569_s16 = sshll.u32 %s3986_s12, 7  ;;  %296 = vst [vmem:[#allocation2 + $0x60] sm:$0x1] %v295_v13  ;;  %353 = vst [vmem:[#allocation2 + $0x68] sm:$0xf] %v352_v14  ;;  %s2788_s23 = smov 32  }
  0x10   : > { %s2867_s19 = scalar_lea.vmem %s3971_s0, %s2569_s16  ;;  %v354_v15 = vld [vmem:[#allocation2 + $0x74] sm:$0xf]  ;;  %v270_v19 = vld [vmem:[#allocation2] sm:$0x1]  ;;  %v327_v20 = vld [vmem:[#allocation2 + $0x8] sm:$0xf] }
  0x11   : > { %v397_v16 = vld [vmem:[%s2867_s19 + $0x40] sm:$0xf]  ;;  %v398_v17 = vld [vmem:[%s2867_s19 + $0x44] sm:$0xf]  ;;  %v271_v21 = vsel %vm2835_vm3, 0, %v270_v19  ;;  %v328_v22 = vsel %vm2843_vm5, 0, %v327_v20  ;;  %vm2885_vm8 = vmor %vm268_vm2, %vm414_vm6 }
  0x12   : > { %v381_v18 = vld [vmem:[%s2867_s19] sm:$0xf]  ;;  %v553_v23 = vshrl.u32 %v397_v16, 16  ;;  %v556_v24 = vshll.u32 %v397_v16, 16  ;;  %v382_v25 = vld [vmem:[%s2867_s19 + $0x4] sm:$0xf] }
  0x13   : > { %272 = vst [vmem:[#allocation2] sm:$0x1] %v271_v21  ;;  %329 = vst [vmem:[#allocation2 + $0x8] sm:$0xf] %v328_v22  ;;  %v561_v26 = vshrl.u32 %v398_v17, 16  ;;  %v564_v27 = vshll.u32 %v398_v17, 16 }
  0x14   : > { %v417_v28 = vshrl.u32 %v381_v18, 16  ;;  %v420_v29 = vshll.u32 %v381_v18, 16  ;;  %v555_v30 = vrot.slane %v553_v23, 7  ;;  %v799_v31 = vld [vmem:[#allocation2 + $0x6c] sm:$0xf]  ;;  %v425_v32 = vshrl.u32 %v382_v25, 16 }
  0x15   : > { %v428_v33 = vshll.u32 %v382_v25, 16  ;;  %v355_v34 = vsel %vm2843_vm5, 0, %v354_v15  ;;  %v2879_v35 = vrot.slane %v561_v26, 7  ;;  %v399_v37 = vld [vmem:[%s2867_s19 + $0x48] sm:$0xf]  ;;  %s2789_s24 = smov 40  }
  0x16   : > { %v419_v36 = vrot.slane %v417_v28, 7  ;;  %v400_v38 = vld [vmem:[%s2867_s19 + $0x4c] sm:$0xf]  ;;  %356 = vst [vmem:[#allocation2 + $0x74] sm:$0xf] %v355_v34  ;;  %v558_v40 = vor.u32 %v556_v24, %v555_v30  ;;  %v559_v41 = vrot.slane %v555_v30, 4 }
  0x17   : > { %v2889_v42 = vrot.slane %v425_v32, 7  ;;  %v740_v43 = vld [vmem:[#allocation2 + $0xc] sm:$0xf]  ;;  %v570_v44 = vshrl.u32 %v399_v37, 16  ;;  %v566_v45 = vor.u32 %v564_v27, %v2879_v35  ;;  %v573_v48 = vshll.u32 %v399_v37, 16  ;;  %s2790_s29 = smov 48  }
  0x18   : > { %v422_v46 = vor.u32 %v420_v29, %v419_v36  ;;  %v423_v47 = vrot.slane %v419_v36, 4  ;;  %v383_v49 = vld [vmem:[%s2867_s19 + $0x8] sm:$0xf]  ;;  %v800_v50 = vsel %vm2843_vm5, %v558_v40, %v799_v31  ;;  %v578_v53 = vshrl.u32 %v400_v38, 16  ;;  %v806_v54 = vld [vmem:[#allocation2 + $0x78] sm:$0xf] }
  0x19   : > { %v430_v51 = vor.u32 %v428_v33, %v2889_v42  ;;  %v572_v52 = vrot.slane %v570_v44, 7  ;;  %v384_v55 = vld [vmem:[%s2867_s19 + $0xc] sm:$0xf]  ;;  %v567_v56 = vsel %vm2885_vm8, %v559_v41, %v566_v45  ;;  %801 = vst [vmem:[#allocation2 + $0x6c] sm:$0xf] %v800_v50  ;;  %v581_v58 = vshll.u32 %v400_v38, 16 }
  0x1a   : > { %v741_v57 = vsel %vm2843_vm5, %v422_v46, %v740_v43  ;;  %v434_v59 = vshrl.u32 %v383_v49, 16  ;;  %v395_v60 = vld [vmem:[%s2867_s19 + $0x38] sm:$0xf]  ;;  %v396_v61 = vld [vmem:[%s2867_s19 + $0x3c] sm:$0xf]  ;;  %v2903_v62 = vld [vmem:[#allocation2] sm:$0xff]  }
  0x1b   : > { %802 = vst.msk [vmem:[#allocation2 + $0x70] sm:$0xf] %vm259_vm0, %v567_v56  ;;  %v431_v63 = vsel %vm2885_vm8, %v423_v47, %v430_v51  ;;  %742 = vst [vmem:[#allocation2 + $0xc] sm:$0xf] %v741_v57  ;;  %v575_v0 = vor.u32 %v573_v48, %v572_v52  ;;  %v576_v2 = vrot.slane %v572_v52, 4  ;;  %v2911_v5 = vrot.slane %v578_v53, 7 }
  0x1c   : > { %v2908_v4 = vld [vmem:[#allocation2 + $0x8] ss:$0 sps:$4 sm:$0xff]   ;;  %744 = vst.msk [vmem:[#allocation2 + $0x10] sm:$0xf] %vm259_vm0, %v431_v63  ;;  %v436_v6 = vrot.slane %v434_v59, 7  ;;  %v437_v7 = vshll.u32 %v383_v49, 16 }
  0x1d   : > { %v442_v8 = vshrl.u32 %v384_v55, 16  ;;  %v1263_v9 = vrot.slane %v2903_v62, 1  ;;  %v807_v10 = vsel %vm2843_vm5, %v575_v0, %v806_v54  ;;  %v445_v11 = vshll.u32 %v384_v55, 16  ;;  %v750_v12 = vld [vmem:[#allocation2 + $0x18] sm:$0xf]  ;;  %s2791_s7 = smov 56  }
  0x1e   : > { %v536_v13 = vshrl.u32 %v395_v60, 16  ;;  %v1264_v14 = vrot.slane %v2908_v4, 1  ;;  %v583_v15 = vor.u32 %v581_v58, %v2911_v5  ;;  %808 = vst [vmem:[#allocation2 + $0x78] sm:$0xf] %v807_v10  ;;  %v439_v16 = vor.u32 %v437_v7, %v436_v6  ;;  %v792_v26 = vld [vmem:[#allocation2 + $0x60] sm:$0xf] }
  0x1f   : > { %v440_v17 = vrot.slane %v436_v6, 4  ;;  %v2918_v18 = vrot.slane %v442_v8, 7  ;;  %v539_v20 = vshll.u32 %v395_v60, 16  ;;  %v544_v21 = vshrl.u32 %v396_v61, 16  ;;  %v330_v27 = vld [vmem:[#allocation2 + $0x14] sm:$0xf] }
  0x20   : > { %v538_v19 = vrot.slane %v536_v13, 7  ;;  %v1265_v22 = vsel %vm1262_vm7, %v1263_v9, %v1264_v14  ;;  %v584_v23 = vsel %vm2885_vm8, %v576_v2, %v583_v15  ;;  %v751_v24 = vsel %vm2843_vm5, %v439_v16, %v750_v12  ;;  %v796_v32 = vld [vmem:[#allocation2 + $0x68] sm:$0x1]  ;;  %v803_v41 = vld [vmem:[#allocation2 + $0x74] sm:$0x1]  ;;  %s2792_s8 = smov 64  }
  0x21   : > { %v547_v25 = vshll.u32 %v396_v61, 16  ;;  %1311 = vrot.lane.b32.xlu0 %v1265_v22, %s2785_s20  ;;  %809 = vst.msk [vmem:[#allocation2 + $0x7c] sm:$0xf] %vm259_vm0, %v584_v23  ;;  %v447_v28 = vor.u32 %v445_v11, %v2918_v18  ;;  %752 = vst [vmem:[#allocation2 + $0x18] sm:$0xf] %v751_v24  ;;  %v546_v31 = vrot.slane %v544_v21, 7 }
  0x22   : > { %v541_v29 = vor.u32 %v539_v20, %v538_v19  ;;  %v542_v30 = vrot.slane %v538_v19, 4  ;;  %v2928_v33 = vld [vmem:[#allocation2 + $0x6c] sm:$0xff]   ;;  %v1041_v43 = vshll.u32 %v2903_v62, 16  ;;  %v568_v44 = vrot.slane %v2879_v35, 4  ;;  %v333_v48 = vld [vmem:[#allocation2 + $0x20] sm:$0xf] }
  0x23   : > { %v2930_v34 = vld [vmem:[#allocation2 + $0xc] sm:$0xff]   ;;  %v448_v36 = vsel %vm2885_vm8, %v440_v17, %v447_v28  ;;  %v549_v37 = vor.u32 %v547_v25, %v546_v31  ;;  %v551_v38 = vrot.slane %v546_v31, 4  ;;  %1364 = vrot.lane.b32.xlu1 %v2928_v33, %s2786_s21  ;;  %v331_v47 = vsel %vm2843_vm5, 0, %v330_v27  ;;  %v357_v52 = vld [vmem:[#allocation2 + $0x80] sm:$0xf] }
  0x24   : > { %v793_v40 = vsel %vm2843_vm5, %v541_v29, %v792_v26  ;;  %753 = vst.msk [vmem:[#allocation2 + $0x1c] sm:$0xf] %vm259_vm0, %v448_v36  ;;  %v1039_v49 = vshrl.u32 %v2903_v62, 16  ;;  %v1043_v50 = vrot.slane %v1041_v43, 1  ;;  %v1046_v35 = vshll.u32 %v2908_v4, 16 }
  0x25   : > { %794 = vst [vmem:[#allocation2 + $0x60] sm:$0xf] %v793_v40  ;;  %1348 = vrot.lane.b32.xlu0 %v2930_v34, %s2786_s21  ;;  %v550_v45 = vsel %vm2885_vm8, %v542_v30, %v549_v37  ;;  %v797_v46 = vsel %vm2835_vm3, %v551_v38, %v796_v32  ;;  %v804_v51 = vsel %vm2835_vm3, %v568_v44, %v803_v41  ;;  %332 = vst [vmem:[#allocation2 + $0x14] sm:$0xf] %v331_v47  ;;  %vm1037_vm9 = vsmask.f32 7424 }
  0x26   : > { %795 = vst.msk [vmem:[#allocation2 + $0x64] sm:$0xf] %vm259_vm0, %v550_v45  ;;  %798 = vst [vmem:[#allocation2 + $0x68] sm:$0x1] %v797_v46  ;;  %v1053_v53 = vshll.u32 %v2930_v34, 16  ;;  %v1149_v54 = vshll.u32 %v2928_v33, 16  ;;  %v1044_v59 = vor.u32 %v1043_v50, %v1039_v49 }
  0x27   : > { %805 = vst [vmem:[#allocation2 + $0x74] sm:$0x1] %v804_v51  ;;  %v334_v56 = vsel %vm2843_vm5, 0, %v333_v48  ;;  %v358_v57 = vsel %vm2843_vm5, 0, %v357_v52  ;;  %v279_v58 = vld [vmem:[#allocation2 + $0x24] sm:$0x1] }
  0x28   : > { %v2956_v55 = vld [vmem:[#allocation2 + $0x78] sm:$0xff]   ;;  %335 = vst [vmem:[#allocation2 + $0x20] sm:$0xf] %v334_v56  ;;  %v1048_v60 = vrot.slane %v1046_v35, 1  ;;  %v432_v61 = vrot.slane %v2889_v42, 4  ;;  %v1051_v62 = vshrl.u32 %v2930_v34, 16 }
  0x29   : > { %1366 = vrot.lane.b32.xlu1 %v2956_v55, %s2786_s21  ;;  %359 = vst [vmem:[#allocation2 + $0x80] sm:$0xf] %v358_v57  ;;  %v1147_v0 = vshrl.u32 %v2928_v33, 16  ;;  %v1055_v2 = vrot.slane %v1053_v53, 1  ;;  %v1151_v4 = vrot.slane %v1149_v54, 1  ;;  %v449_v6 = vrot.slane %v2918_v18, 4 }
  0x2a   : > { %v280_v7 = vsel %vm2835_vm3, 0, %v279_v58  ;;  %v385_v8 = vld [vmem:[%s2867_s19 + $0x10] sm:$0xf]  ;;  %v585_v9 = vrot.slane %v2911_v5, 4  ;;  %v1049_v11 = vsel %vm1037_vm9, %v1044_v59, %v1048_v60  ;;  %v1290_v14 = vrot.slane %v2928_v33, 1 }
  0x2b   : > { %v2966_v63 = vld [vmem:[#allocation2 + $0x18] sm:$0xff]   ;;  %281 = vst [vmem:[#allocation2 + $0x24] sm:$0x1] %v280_v7  ;;  %v1266_v16 = vrot.slane %v2930_v34, 1  ;;  %v1161_v17 = vshll.u32 %v2956_v55, 16  ;;  %v451_v22 = vshrl.u32 %v385_v8, 16  ;;  %v2990_v23 = vor.u32 %v1055_v2, %v1051_v62 }
  0x2c   : > { %1350 = vrot.lane.b32.xlu0 %v2966_v63, %s2786_s21  ;;  %v747_v15 = vld [vmem:[#allocation2 + $0x14] sm:$0x1]  ;;  %v2993_v25 = vor.u32 %v1151_v4, %v1147_v0  ;;  %v303_v28 = vld [vmem:[#allocation2 + $0x84] sm:$0x1]  ;;  %v1063_v30 = vshrl.u32 %v2966_v63, 16  ;;  %v454_v32 = vshll.u32 %v385_v8, 16 }
  0x2d   : > { %v2975_v42 = vld [vmem:[#allocation2 + $0x60] sm:$0xff]   ;;  %v2718_v10 = vld [vmem:[#allocation2 + $0x68] ss:$0 sps:$4 sm:$0xff]   ;;  %v386_v18 = vld [vmem:[%s2867_s19 + $0x14] sm:$0xf]  ;;  %v748_v5 = vsel %vm2835_vm3, %v432_v61, %v747_v15  ;;  %v1065_v41 = vshll.u32 %v2966_v63, 16 }
  0x2e   : > { %v2979_v12 = vld [vmem:[#allocation2 + $0x74] ss:$0 sps:$4 sm:$0xff]   ;;  %v1287_v13 = vrot.slane %v2975_v42, 1  ;;  %v1288_v19 = vrot.slane %v2718_v10, 1  ;;  %749 = vst [vmem:[#allocation2 + $0x14] sm:$0x1] %v748_v5 }
  0x2f   : > { %v1291_v20 = vrot.slane %v2979_v12, 1  ;;  %v754_v21 = vld [vmem:[#allocation2 + $0x20] sm:$0x1]  ;;  %v1137_v24 = vshll.u32 %v2975_v42, 16  ;;  %v401_v33 = vld [vmem:[%s2867_s19 + $0x50] sm:$0xf] }
  0x30   : > { %1230 = vrot.lane.b32.xlu0 %v1049_v11, %s2787_s22  ;;  %v755_v26 = vsel %vm2835_vm3, %v449_v6, %v754_v21  ;;  %v810_v27 = vld [vmem:[#allocation2 + $0x80] sm:$0x1]  ;;  %v2998_v29 = vsel %vm1262_vm7, %v1287_v13, %v1288_v19  ;;  %v402_v36 = vld [vmem:[%s2867_s19 + $0x54] sm:$0xf]  ;;  %v1135_v38 = vshrl.u32 %v2975_v42, 16  ;;  %v1142_v40 = vshll.u32 %v2718_v10, 16 }
  0x31   : > { %756 = vst [vmem:[#allocation2 + $0x20] sm:$0x1] %v755_v26  ;;  %v811_v31 = vsel %vm2835_vm3, %v585_v9, %v810_v27  ;;  %1327 = vrot.lane.b32.xlu1 %v2998_v29, %s2785_s20  ;;  %v3008_v37 = vsel %vm1262_vm7, %v1290_v14, %v1291_v20  ;;  %v336_v43 = vld [vmem:[#allocation2 + $0x2c] sm:$0xf]  ;;  %v453_v44 = vrot.slane %v451_v22, 7  ;;  %v459_v45 = vshrl.u32 %v386_v18, 16 }
  0x32   : > { %812 = vst [vmem:[#allocation2 + $0x80] sm:$0x1] %v811_v31  ;;  %v462_v46 = vshll.u32 %v386_v18, 16  ;;  %v304_v47 = vsel %vm2835_vm3, 0, %v303_v28  ;;  %v360_v48 = vld [vmem:[#allocation2 + $0x8c] sm:$0xf] }
  0x33   : > { %v1139_v49 = vrot.slane %v1137_v24, 1  ;;  %v1154_v50 = vshll.u32 %v2979_v12, 16  ;;  %v757_v35 = vld [vmem:[#allocation2 + $0x24] sm:$0xf]  ;;  %305 = vst [vmem:[#allocation2 + $0x84] sm:$0x1] %v304_v47  ;;  %v456_v53 = vor.u32 %v454_v32, %v453_v44 }
  0x34   : > { %v587_v51 = vshrl.u32 %v401_v33, 16  ;;  %v590_v52 = vshll.u32 %v401_v33, 16  ;;  %v457_v54 = vrot.slane %v453_v44, 4  ;;  %v461_v56 = vrot.slane %v459_v45, 7  ;;  %v282_v58 = vld [vmem:[#allocation2 + $0x30] sm:$0x1] }
  0x35   : > { %v595_v57 = vshrl.u32 %v402_v36, 16  ;;  %1329 = vrot.lane.b32.xlu1 %v3008_v37, %s2785_s20  ;;  %v598_v60 = vshll.u32 %v402_v36, 16  ;;  %v337_v61 = vsel %vm2843_vm5, 0, %v336_v43  ;;  %v361_v62 = vsel %vm2843_vm5, 0, %v360_v48  ;;  %v387_v0 = vld [vmem:[%s2867_s19 + $0x18] sm:$0xf] }
  0x36   : > { %v589_v59 = vrot.slane %v587_v51, 7  ;;  %v2720_v2 = vld [vmem:[#allocation2 + $0x14] ss:$0 sps:$4 sm:$0xff]   ;;  %v1144_v4 = vrot.slane %v1142_v40, 1  ;;  %v464_v6 = vor.u32 %v462_v46, %v461_v56  ;;  %v758_v7 = vsel %vm2843_vm5, %v456_v53, %v757_v35  ;;  %338 = vst [vmem:[#allocation2 + $0x2c] sm:$0xf] %v337_v61 }
  0x37   : > { %v597_v8 = vrot.slane %v595_v57, 7  ;;  %362 = vst [vmem:[#allocation2 + $0x8c] sm:$0xf] %v361_v62  ;;  %v1140_v42 = vor.u32 %v1139_v49, %v1135_v38  ;;  %759 = vst [vmem:[#allocation2 + $0x24] sm:$0xf] %v758_v7  ;;  %v283_v11 = vsel %vm2835_vm3, 0, %v282_v58 }
  0x38   : > { %v592_v9 = vor.u32 %v590_v52, %v589_v59  ;;  %v593_v10 = vrot.slane %v589_v59, 4  ;;  %v1267_v12 = vrot.slane %v2720_v2, 1  ;;  %v1058_v13 = vshll.u32 %v2720_v2, 16  ;;  %v3026_v14 = vld [vmem:[#allocation2 + $0x20] ss:$0 sps:$4 sm:$0xff]  }
  0x39   : > { %v465_v15 = vsel %vm2885_vm8, %v457_v54, %v464_v6  ;;  %v600_v18 = vor.u32 %v598_v60, %v597_v8  ;;  %284 = vst [vmem:[#allocation2 + $0x30] sm:$0x1] %v283_v11  ;;  %v1156_v19 = vrot.slane %v1154_v50, 1  ;;  %v1067_v20 = vrot.slane %v1065_v41, 1  ;;  %v388_v21 = vld [vmem:[%s2867_s19 + $0x1c] sm:$0xf] }
  0x3a   : > { %760 = vst.msk [vmem:[#allocation2 + $0x28] sm:$0xf] %vm259_vm0, %v465_v15  ;;  %v466_v5 = vrot.slane %v461_v56, 4  ;;  %v468_v22 = vshrl.u32 %v387_v0, 16  ;;  %v3035_v24 = vsel %vm1262_vm7, %v1266_v16, %v1267_v12  ;;  %v1060_v26 = vrot.slane %v1058_v13, 1 }
  0x3b   : > { %v3037_v27 = vld [vmem:[#allocation2 + $0x80] ss:$0 sps:$4 sm:$0xff]   ;;  %v813_v28 = vld [vmem:[#allocation2 + $0x84] sm:$0xf]  ;;  %v602_v31 = vrot.slane %v597_v8, 4  ;;  %1313 = vrot.lane.b32.xlu0 %v3035_v24, %s2785_s20  ;;  %v1159_v32 = vshrl.u32 %v2956_v55, 16  ;;  %v601_v34 = vsel %vm2885_vm8, %v593_v10, %v600_v18  ;;  %v3051_v40 = vsel %vm1037_vm9, %v1140_v42, %v1144_v4 }
  0x3c   : > { %v1163_v33 = vrot.slane %v1161_v17, 1  ;;  %v814_v16 = vsel %vm2843_vm5, %v592_v9, %v813_v28  ;;  %v306_v36 = vld [vmem:[#allocation2 + $0x90] sm:$0x1]  ;;  %v1061_v38 = vsel %vm1037_vm9, %v2990_v23, %v1060_v26  ;;  %v1070_v41 = vshll.u32 %v3026_v14, 16  ;;  %816 = vst.msk [vmem:[#allocation2 + $0x88] sm:$0xf] %vm259_vm0, %v601_v34 }
  0x3d   : > { %815 = vst [vmem:[#allocation2 + $0x84] sm:$0xf] %v814_v16  ;;  %v470_v43 = vrot.slane %v468_v22, 7  ;;  %v403_v17 = vld [vmem:[%s2867_s19 + $0x58] sm:$0xf]  ;;  %1232 = vrot.lane.b32.xlu1 %v1061_v38, %s2787_s22  ;;  %v3060_v45 = vsel %vm1037_vm9, %v2993_v25, %v1156_v19  ;;  %v1068_v23 = vor.u32 %v1067_v20, %v1063_v30  ;;  %v471_v48 = vshll.u32 %v387_v0, 16 }
  0x3e   : > { %v404_v44 = vld [vmem:[%s2867_s19 + $0x5c] sm:$0xf]  ;;  %v761_v46 = vld [vmem:[#allocation2 + $0x2c] sm:$0x1]  ;;  %v476_v49 = vshrl.u32 %v388_v21, 16  ;;  %v1166_v50 = vshll.u32 %v3037_v27, 16  ;;  %v1164_v6 = vor.u32 %v1163_v33, %v1159_v32 }
  0x3f   : > { %v817_v47 = vld [vmem:[#allocation2 + $0x8c] sm:$0x1]  ;;  %v762_v35 = vsel %vm2835_vm3, %v466_v5, %v761_v46  ;;  %v474_v52 = vrot.slane %v470_v43, 4  ;;  %v339_v53 = vld [vmem:[#allocation2 + $0x38] sm:$0xf]  ;;  %1246 = vrot.lane.b32.xlu0 %v3051_v40, %s2787_s22  ;;  %v473_v25 = vor.u32 %v471_v48, %v470_v43  ;;  %v479_v54 = vshll.u32 %v388_v21, 16 }
  0x40   : > { %v818_v51 = vsel %vm2835_vm3, %v602_v31, %v817_v47  ;;  %763 = vst [vmem:[#allocation2 + $0x2c] sm:$0x1] %v762_v35  ;;  %v478_v30 = vrot.slane %v476_v49, 7  ;;  %v764_v56 = vld [vmem:[#allocation2 + $0x30] sm:$0xf]  ;;  %v307_v57 = vsel %vm2835_vm3, 0, %v306_v36 }
  0x41   : > { %819 = vst [vmem:[#allocation2 + $0x8c] sm:$0x1] %v818_v51  ;;  %v1072_v58 = vrot.slane %v1070_v41, 1  ;;  %308 = vst [vmem:[#allocation2 + $0x90] sm:$0x1] %v307_v57  ;;  %v604_v59 = vshrl.u32 %v403_v17, 16  ;;  %1248 = vrot.lane.b32.xlu1 %v3060_v45, %s2787_s22  ;;  %v765_v0 = vsel %vm2843_vm5, %v473_v25, %v764_v56 }
  0x42   : > { %v607_v60 = vshll.u32 %v403_v17, 16  ;;  %v612_v61 = vshrl.u32 %v404_v44, 16  ;;  %v481_v62 = vor.u32 %v479_v54, %v478_v30  ;;  %v615_v2 = vshll.u32 %v404_v44, 16  ;;  %766 = vst [vmem:[#allocation2 + $0x30] sm:$0xf] %v765_v0  ;;  %v3112_v43 = vld [vmem:[#allocation2 + $0x24] sm:$0xff]  }
  0x43   : > { %v340_v4 = vsel %vm2843_vm5, 0, %v339_v53  ;;  %v1168_v7 = vrot.slane %v1166_v50, 1  ;;  %v606_v8 = vrot.slane %v604_v59, 7  ;;  %1395 = vrot.lane.b32.xlu0 %v1061_v38, %s2788_s23  ;;  %v3085_v10 = vsel %vm1037_vm9, %v1068_v23, %v1072_v58  ;;  %v363_v13 = vld [vmem:[#allocation2 + $0x98] sm:$0xf]  ;;  %v2739_v35 = vld [vmem:[%s3972_s1] sm:$0xff]  }
  0x44   : > { %341 = vst [vmem:[#allocation2 + $0x38] sm:$0xf] %v340_v4  ;;  %v482_v42 = vsel %vm2885_vm8, %v474_v52, %v481_v62  ;;  %v3082_v9 = vrot.slane %v612_v61, 7  ;;  %v285_v18 = vld [vmem:[#allocation2 + $0x3c] sm:$0x1]  ;;  %v1293_v20 = vrot.slane %v2956_v55, 1  ;;  %2624 = vmatprep.subr.bf16.mxu0 %v2739_v35  ;;  %2666 = vmatprep.subr.bf16.mxu1 %v2739_v35 }
  0x45   : > { %767 = vst.msk [vmem:[#allocation2 + $0x34] sm:$0xf] %vm259_vm0, %v482_v42  ;;  %v609_v11 = vor.u32 %v607_v60, %v606_v8  ;;  %v610_v12 = vrot.slane %v606_v8, 4  ;;  %1411 = vrot.lane.b32.xlu1 %v3060_v45, %s2788_s23  ;;  %v3092_v19 = vsel %vm1037_vm9, %v1164_v6, %v1168_v7  ;;  %v483_v5 = vrot.slane %v478_v30, 4  ;;  %v389_v31 = vld [vmem:[%s2867_s19 + $0x20] sm:$0xf]  ;;  %2625 = vmatpush3.bf16.msra.mxu0 %v2739_v35 }
  0x46   : > { %v617_v15 = vor.u32 %v615_v2, %v3082_v9  ;;  %v1269_v21 = vrot.slane %v2966_v63, 1  ;;  %v364_v28 = vsel %vm2843_vm5, 0, %v363_v13  ;;  %v1270_v32 = vrot.slane %v3026_v14, 1  ;;  %v390_v16 = vld [vmem:[%s2867_s19 + $0x24] sm:$0xf]  ;;  %2671 = vmatpush3.bf16.msra.mxu1 %v2739_v35  ;;  %v2740_v2 = vld [vmem:[%s3972_s1 + $0x8] sm:$0xff]  }
  0x47   : > { %1397 = vrot.lane.b32.xlu0 %v3085_v10, %s2788_s23  ;;  %v1294_v33 = vrot.slane %v3037_v27, 1  ;;  %365 = vst [vmem:[#allocation2 + $0x98] sm:$0xf] %v364_v28  ;;  %v309_v36 = vld [vmem:[#allocation2 + $0x9c] sm:$0x1]  ;;  %v286_v27 = vsel %vm2835_vm3, 0, %v285_v18  ;;  %2626 = vmatprep.subr.bf16.mxu0 %v2740_v2 }
  0x48   : > { %v618_v22 = vsel %vm2885_vm8, %v610_v12, %v617_v15  ;;  %v820_v26 = vld [vmem:[#allocation2 + $0x90] sm:$0xf]  ;;  %v405_v41 = vld [vmem:[%s2867_s19 + $0x60] sm:$0xf]  ;;  %v406_v17 = vld [vmem:[%s2867_s19 + $0x64] sm:$0xf]  ;;  %v3123_v47 = vsel %vm1262_vm7, %v1269_v21, %v1270_v32  ;;  %2667 = vmatprep.subr.bf16.mxu1 %v2740_v2 }
  0x49   : > { %v821_v34 = vsel %vm2843_vm5, %v609_v11, %v820_v26  ;;  %823 = vst.msk [vmem:[#allocation2 + $0x94] sm:$0xf] %vm259_vm0, %v618_v22  ;;  %1413 = vrot.lane.b32.xlu1 %v3092_v19, %s2788_s23  ;;  %v619_v44 = vrot.slane %v3082_v9, 4  ;;  %287 = vst [vmem:[#allocation2 + $0x3c] sm:$0x1] %v286_v27  ;;  %v485_v23 = vshrl.u32 %v389_v31, 16  ;;  %2627 = vmatpush3.bf16.msra.mxu0 %v2740_v2 }
  0x4a   : > { %822 = vst [vmem:[#allocation2 + $0x90] sm:$0xf] %v821_v34  ;;  %v488_v46 = vshll.u32 %v389_v31, 16  ;;  %v493_v48 = vshrl.u32 %v390_v16, 16  ;;  %v496_v49 = vshll.u32 %v390_v16, 16  ;;  %v310_v50 = vsel %vm2835_vm3, 0, %v309_v36  ;;  %2672 = vmatpush3.bf16.msra.mxu1 %v2740_v2 }
  0x4b   : > { %v768_v38 = vld [vmem:[#allocation2 + $0x38] sm:$0x1]  ;;  %1430 = vrot.lane.b32.xlu0 %v3035_v24, %s2789_s24  ;;  %v3133_v24 = vsel %vm1262_vm7, %v1293_v20, %v1294_v33  ;;  %v3135_v51 = vld [vmem:[#allocation2 + $0x84] sm:$0xff]   ;;  %311 = vst [vmem:[#allocation2 + $0x9c] sm:$0x1] %v310_v50  ;;  %v1077_v52 = vshll.u32 %v3112_v43, 16 }
  0x4c   : > { %v769_v14 = vsel %vm2835_vm3, %v483_v5, %v768_v38  ;;  %v487_v53 = vrot.slane %v485_v23, 7  ;;  %v3138_v25 = vrot.slane %v493_v48, 7  ;;  %v621_v30 = vshrl.u32 %v405_v41, 16  ;;  %v3142_v58 = vld [vmem:[#allocation2 + $0x2c] ss:$0 sps:$4 sm:$0xff]   ;;  %v2741_v32 = vld [vmem:[%s3972_s1 + $0x10] sm:$0xff]  }
  0x4d   : > { %770 = vst [vmem:[#allocation2 + $0x38] sm:$0x1] %v769_v14  ;;  %1446 = vrot.lane.b32.xlu1 %v3008_v37, %s2789_s24  ;;  %v624_v56 = vshll.u32 %v405_v41, 16  ;;  %v629_v57 = vshrl.u32 %v406_v17, 16  ;;  %v342_v0 = vld [vmem:[#allocation2 + $0x44] sm:$0xf]  ;;  %2628 = vmatprep.subr.bf16.mxu0 %v2741_v32 }
  0x4e   : > { %v824_v54 = vld [vmem:[#allocation2 + $0x98] sm:$0x1]  ;;  %v490_v60 = vor.u32 %v488_v46, %v487_v53  ;;  %v491_v61 = vrot.slane %v487_v53, 4  ;;  %v498_v62 = vor.u32 %v496_v49, %v3138_v25  ;;  %v1173_v4 = vshll.u32 %v3135_v51, 16  ;;  %v3155_v42 = vld [vmem:[#allocation2 + $0x8c] ss:$0 sps:$4 sm:$0xff]   ;;  %2668 = vmatprep.subr.bf16.mxu1 %v2741_v32  ;;  %2629 = vmatpush3.bf16.msra.mxu0 %v2741_v32 }
  0x4f   : > { %1432 = vrot.lane.b32.xlu0 %v3123_v47, %s2789_s24  ;;  %v825_v59 = vsel %vm2835_vm3, %v619_v44, %v824_v54  ;;  %v623_v6 = vrot.slane %v621_v30, 7  ;;  %v3153_v7 = vrot.slane %v629_v57, 7  ;;  %v632_v8 = vshll.u32 %v406_v17, 16  ;;  %v366_v11 = vld [vmem:[#allocation2 + $0xa4] sm:$0xf]  ;;  %v2742_v14 = vld [vmem:[%s3972_s1 + $0x18] sm:$0xff]   ;;  %2673 = vmatpush3.bf16.msra.mxu1 %v2741_v32 }
  0x50   : > { %826 = vst [vmem:[#allocation2 + $0x98] sm:$0x1] %v825_v59  ;;  %v499_v9 = vsel %vm2885_vm8, %v491_v61, %v498_v62  ;;  %v1075_v12 = vshrl.u32 %v3112_v43, 16  ;;  %v771_v13 = vld [vmem:[#allocation2 + $0x3c] sm:$0xf]  ;;  %v1079_v5 = vrot.slane %v1077_v52, 1  ;;  %2630 = vmatprep.subr.bf16.mxu0 %v2742_v14  ;;  %2669 = vmatprep.subr.bf16.mxu1 %v2742_v14 }
  0x51   : > { %1448 = vrot.lane.b32.xlu1 %v3133_v24, %s2789_s24  ;;  %774 = vst.msk [vmem:[#allocation2 + $0x40] sm:$0xf] %vm259_vm0, %v499_v9  ;;  %v626_v15 = vor.u32 %v624_v56, %v623_v6  ;;  %v627_v18 = vrot.slane %v623_v6, 4  ;;  %v634_v20 = vor.u32 %v632_v8, %v3153_v7  ;;  %v1082_v21 = vshll.u32 %v3142_v58, 16  ;;  %v391_v31 = vld [vmem:[%s2867_s19 + $0x28] sm:$0xf] }
  0x52   : > { %v1171_v22 = vshrl.u32 %v3135_v51, 16  ;;  %v772_v26 = vsel %vm2843_vm5, %v490_v60, %v771_v13  ;;  %v827_v28 = vld [vmem:[#allocation2 + $0x9c] sm:$0xf]  ;;  %v1175_v33 = vrot.slane %v1173_v4, 1  ;;  %v343_v36 = vsel %vm2843_vm5, 0, %v342_v0  ;;  %2631 = vmatpush3.bf16.msra.mxu0 %v2742_v14 }
  0x53   : > { %1467 = vrot.lane.b32.xlu0 %v2966_v63, %s2790_s29  ;;  %v288_v63 = vld [vmem:[#allocation2 + $0x48] sm:$0x1]  ;;  %773 = vst [vmem:[#allocation2 + $0x3c] sm:$0xf] %v772_v26  ;;  %v635_v34 = vsel %vm2885_vm8, %v627_v18, %v634_v20  ;;  %v828_v16 = vsel %vm2843_vm5, %v626_v15, %v827_v28  ;;  %v1178_v38 = vshll.u32 %v3155_v42, 16  ;;  %v1080_v17 = vor.u32 %v1079_v5, %v1075_v12 }
  0x54   : > { %829 = vst [vmem:[#allocation2 + $0x9c] sm:$0xf] %v828_v16  ;;  %830 = vst.msk [vmem:[#allocation2 + $0xa0] sm:$0xf] %vm259_vm0, %v635_v34  ;;  %v392_v41 = vld [vmem:[%s2867_s19 + $0x2c] sm:$0xf]  ;;  %v1176_v46 = vor.u32 %v1175_v33, %v1171_v22  ;;  %2674 = vmatpush3.bf16.msra.mxu1 %v2742_v14 }
  0x55   : > { %1483 = vrot.lane.b32.xlu1 %v2956_v55, %s2790_s29  ;;  %344 = vst [vmem:[#allocation2 + $0x44] sm:$0xf] %v343_v36  ;;  %v367_v55 = vsel %vm2843_vm5, 0, %v366_v11  ;;  %v312_v27 = vld [vmem:[#allocation2 + $0xa8] sm:$0x1]  ;;  %v1084_v44 = vrot.slane %v1082_v21, 1 }
  0x56   : > { %368 = vst [vmem:[#allocation2 + $0xa4] sm:$0xf] %v367_v55  ;;  %v407_v23 = vld [vmem:[%s2867_s19 + $0x68] sm:$0xf]  ;;  %v289_v48 = vsel %vm2835_vm3, 0, %v288_v63  ;;  %v502_v49 = vshrl.u32 %v391_v31, 16 }
  0x57   : > { %1469 = vrot.lane.b32.xlu0 %v3112_v43, %s2790_s29  ;;  %v510_v50 = vshrl.u32 %v392_v41, 16  ;;  %v408_v35 = vld [vmem:[%s2867_s19 + $0x6c] sm:$0xf]  ;;  %v1180_v52 = vrot.slane %v1178_v38, 1  ;;  %290 = vst [vmem:[#allocation2 + $0x48] sm:$0x1] %v289_v48  ;;  %v3205_v61 = vsel %vm1037_vm9, %v1080_v17, %v1084_v44 }
  0x58   : > { %v505_v53 = vshll.u32 %v391_v31, 16  ;;  %v513_v30 = vshll.u32 %v392_v41, 16  ;;  %v313_v54 = vsel %vm2835_vm3, 0, %v312_v27  ;;  %v500_v56 = vrot.slane %v3138_v25, 4  ;;  %v345_v15 = vld [vmem:[#allocation2 + $0x50] sm:$0xf] }
  0x59   : > { %1485 = vrot.lane.b32.xlu1 %v3135_v51, %s2790_s29  ;;  %v636_v57 = vrot.slane %v3153_v7, 4  ;;  %v504_v59 = vrot.slane %v502_v49, 7  ;;  %v3202_v60 = vrot.slane %v510_v50, 7  ;;  %314 = vst [vmem:[#allocation2 + $0xa8] sm:$0x1] %v313_v54  ;;  %v638_v62 = vshrl.u32 %v407_v23, 16 }
  0x5a   : > { %v646_v4 = vshrl.u32 %v408_v35, 16  ;;  %v3211_v25 = vsel %vm1037_vm9, %v1176_v46, %v1180_v52  ;;  %v641_v12 = vshll.u32 %v407_v23, 16  ;;  %v649_v13 = vshll.u32 %v408_v35, 16  ;;  %v369_v20 = vld [vmem:[#allocation2 + $0xb0] sm:$0xf] }
  0x5b   : > { %1514 = vrot.lane.b32.xlu0 %v3085_v10, %s2791_s7  ;;  %v508_v0 = vrot.slane %v504_v59, 4  ;;  %v515_v2 = vor.u32 %v513_v30, %v3202_v60  ;;  %v507_v8 = vor.u32 %v505_v53, %v504_v59  ;;  %v640_v21 = vrot.slane %v638_v62, 7  ;;  %v291_v26 = vld [vmem:[#allocation2 + $0x54] sm:$0x1]  ;;  %v393_v32 = vld [vmem:[%s2867_s19 + $0x30] sm:$0xf] }
  0x5c   : > { %v775_v6 = vld [vmem:[#allocation2 + $0x44] sm:$0x1]  ;;  %v648_v22 = vrot.slane %v646_v4, 7  ;;  %v346_v31 = vsel %vm2843_vm5, 0, %v345_v15  ;;  %v1272_v33 = vrot.slane %v3112_v43, 1  ;;  %v1273_v55 = vrot.slane %v3142_v58, 1 }
  0x5d   : > { %1530 = vrot.lane.b32.xlu1 %v3092_v19, %s2791_s7  ;;  %v831_v7 = vld [vmem:[#allocation2 + $0xa4] sm:$0x1]  ;;  %v776_v9 = vsel %vm2835_vm3, %v500_v56, %v775_v6  ;;  %v516_v18 = vsel %vm2885_vm8, %v508_v0, %v515_v2  ;;  %v643_v34 = vor.u32 %v641_v12, %v640_v21  ;;  %v644_v16 = vrot.slane %v640_v21, 4  ;;  %347 = vst [vmem:[#allocation2 + $0x50] sm:$0xf] %v346_v31 }
  0x5e   : > { %v832_v11 = vsel %vm2835_vm3, %v636_v57, %v831_v7  ;;  %777 = vst [vmem:[#allocation2 + $0x44] sm:$0x1] %v776_v9  ;;  %v778_v5 = vld [vmem:[#allocation2 + $0x48] sm:$0xf]  ;;  %781 = vst.msk [vmem:[#allocation2 + $0x4c] sm:$0xf] %vm259_vm0, %v516_v18  ;;  %v651_v36 = vor.u32 %v649_v13, %v648_v22  ;;  %v3251_v35 = vsel %vm1262_vm7, %v1272_v33, %v1273_v55 }
  0x5f   : > { %1516 = vrot.lane.b32.xlu0 %v3205_v61, %s2791_s7  ;;  %833 = vst [vmem:[#allocation2 + $0xa4] sm:$0x1] %v832_v11  ;;  %v779_v28 = vsel %vm2843_vm5, %v507_v8, %v778_v5  ;;  %v394_v38 = vld [vmem:[%s2867_s19 + $0x34] sm:$0xf]  ;;  %v1296_v41 = vrot.slane %v3135_v51, 1  ;;  %v370_v14 = vsel %vm2843_vm5, 0, %v369_v20 }
  0x60   : > { %v834_v63 = vld [vmem:[#allocation2 + $0xa8] sm:$0xf]  ;;  %780 = vst [vmem:[#allocation2 + $0x48] sm:$0xf] %v779_v28  ;;  %v292_v27 = vsel %vm2835_vm3, 0, %v291_v26  ;;  %v1297_v17 = vrot.slane %v3155_v42, 1  ;;  %v652_v44 = vsel %vm2885_vm8, %v644_v16, %v651_v36 }
  0x61   : > { %1532 = vrot.lane.b32.xlu1 %v3211_v25, %s2791_s7  ;;  %v835_v58 = vsel %vm2843_vm5, %v643_v34, %v834_v63  ;;  %371 = vst [vmem:[#allocation2 + $0xb0] sm:$0xf] %v370_v14  ;;  %293 = vst [vmem:[#allocation2 + $0x54] sm:$0x1] %v292_v27  ;;  %v519_v23 = vshrl.u32 %v393_v32, 16  ;;  %v522_v46 = vshll.u32 %v393_v32, 16 }
  0x62   : > { %836 = vst [vmem:[#allocation2 + $0xa8] sm:$0xf] %v835_v58  ;;  %837 = vst.msk [vmem:[#allocation2 + $0xac] sm:$0xf] %vm259_vm0, %v652_v44  ;;  %v527_v48 = vshrl.u32 %v394_v38, 16  ;;  %v530_v42 = vshll.u32 %v394_v38, 16 }
  0x63   : > { %1549 = vrot.lane.b32.xlu0 %v3123_v47, %s2792_s8  ;;  %v315_v49 = vld [vmem:[#allocation2 + $0xb4] sm:$0x1]  ;;  %v409_v50 = vld [vmem:[%s2867_s19 + $0x70] sm:$0xf]  ;;  %v517_v52 = vrot.slane %v3202_v60, 4  ;;  %v521_v53 = vrot.slane %v519_v23, 7 }
  0x64   : > { %v3254_v30 = vrot.slane %v527_v48, 7  ;;  %v653_v54 = vrot.slane %v648_v22, 4  ;;  %v316_v56 = vsel %vm2835_vm3, 0, %v315_v49  ;;  %v655_v57 = vshrl.u32 %v409_v50, 16  ;;  %v782_v60 = vld [vmem:[#allocation2 + $0x50] sm:$0x1] }
  0x65   : > { %1565 = vrot.lane.b32.xlu1 %v3133_v24, %s2792_s8  ;;  %v524_v59 = vor.u32 %v522_v46, %v521_v53  ;;  %v525_v62 = vrot.slane %v521_v53, 4  ;;  %317 = vst [vmem:[#allocation2 + $0xb4] sm:$0x1] %v316_v56  ;;  %v410_v9 = vld [vmem:[%s2867_s19 + $0x74] sm:$0xf]  ;;  %v658_v12 = vshll.u32 %v409_v50, 16 }
  0x66   : > { %v532_v0 = vor.u32 %v530_v42, %v3254_v30  ;;  %v657_v6 = vrot.slane %v655_v57, 7  ;;  %v2745_v13 = vld [vmem:[%s3972_s1 + $0x20] ss:$0 sps:$4 sm:$0xff]   ;;  %v348_v15 = vld [vmem:[#allocation2 + $0x5c] sm:$0xf]  ;;  %v663_v5 = vshrl.u32 %v410_v9, 16 }
  0x67   : > { %1234 = vrot.lane.b32.xlu0 %v3085_v10, %s2787_s22  ;;  %v3261_v10 = vsel %vm1262_vm7, %v1296_v41, %v1297_v17  ;;  %v372_v18 = vld [vmem:[#allocation2 + $0xbc] sm:$0xf]  ;;  %v666_v21 = vshll.u32 %v410_v9, 16  ;;  %v318_v22 = vld [vmem:[#allocation2 + $0xc0] sm:$0x1]  ;;  %vm1914_vm10 = vcmask 1043456  }
  0x68   : > { %v838_v2 = vld [vmem:[#allocation2 + $0xb0] sm:$0x1]  ;;  %v785_v4 = vld [vmem:[#allocation2 + $0x54] sm:$0xf]  ;;  %v533_v8 = vsel %vm2885_vm8, %v525_v62, %v532_v0  ;;  %v660_v20 = vor.u32 %v658_v12, %v657_v6  ;;  %v411_v26 = vld [vmem:[%s2867_s19 + $0x78] sm:$0xf]  ;;  %2676 = vmatprep.subr.msk.bf16.mxu0 %vm1914_vm10, %v2745_v13  ;;  %2677 = vmatprep.subr.msk.bf16.mxu1 %vm1914_vm10, %v2745_v13 }
  0x69   : > { %1250 = vrot.lane.b32.xlu1 %v3092_v19, %s2787_s22  ;;  %v783_v19 = vsel %vm2835_vm3, %v517_v52, %v782_v60  ;;  %v839_v7 = vsel %vm2835_vm3, %v653_v54, %v838_v2  ;;  %v786_v11 = vsel %vm2843_vm5, %v524_v59, %v785_v4  ;;  %788 = vst.msk [vmem:[#allocation2 + $0x58] sm:$0xf] %vm259_vm0, %v533_v8  ;;  %v349_v63 = vsel %vm2843_vm5, 0, %v348_v15  ;;  %v3296_v55 = vld [vmem:[#allocation2 + $0x30] sm:$0xff]   ;;  %v412_v14 = vld [vmem:[%s2867_s19 + $0x7c] sm:$0xf] }
  0x6a   : > { %784 = vst [vmem:[#allocation2 + $0x50] sm:$0x1] %v783_v19  ;;  %840 = vst [vmem:[#allocation2 + $0xb0] sm:$0x1] %v839_v7  ;;  %v661_v31 = vrot.slane %v657_v6, 4  ;;  %v665_v32 = vrot.slane %v663_v5, 7 }
  0x6b   : > { %1551 = vrot.lane.b32.xlu0 %v3251_v35, %s2792_s8  ;;  %787 = vst [vmem:[#allocation2 + $0x54] sm:$0xf] %v786_v11  ;;  %v1916_v34 = vsel %vm1914_vm10, %v2745_v13, 0  ;;  %350 = vst [vmem:[#allocation2 + $0x5c] sm:$0xf] %v349_v63  ;;  %v373_v16 = vsel %vm2843_vm5, 0, %v372_v18 }
  0x6c   : > { %v841_v28 = vld [vmem:[#allocation2 + $0xb4] sm:$0xf]  ;;  %2633 = vmatpush3.bf16.msra.mxu0 %v1916_v34  ;;  %v319_v36 = vsel %vm2835_vm3, 0, %v318_v22  ;;  %v672_v38 = vshrl.u32 %v411_v26, 16  ;;  %v668_v41 = vor.u32 %v666_v21, %v665_v32  ;;  %2675 = vmatpush3.bf16.msra.mxu1 %v1916_v34  ;;  %374 = vst [vmem:[#allocation2 + $0xbc] sm:$0xf] %v373_v16 }
  0x6d   : > { %1567 = vrot.lane.b32.xlu1 %v3261_v10, %s2792_s8  ;;  %v842_v33 = vsel %vm2843_vm5, %v660_v20, %v841_v28  ;;  %320 = vst [vmem:[#allocation2 + $0xc0] sm:$0x1] %v319_v36  ;;  %v3301_v27 = vld [vmem:[#allocation2 + $0x90] sm:$0xff]   ;;  %v534_v44 = vrot.slane %v3254_v30, 4  ;;  %v680_v23 = vshrl.u32 %v412_v14, 16  ;;  %v1089_v48 = vshll.u32 %v3296_v55, 16 }
  0x6e   : > { %843 = vst [vmem:[#allocation2 + $0xb4] sm:$0xf] %v842_v33  ;;  %v669_v17 = vsel %vm2885_vm8, %v661_v31, %v668_v41  ;;  %v674_v58 = vrot.slane %v672_v38, 7  ;;  %v2729_v46 = vld [vmem:[#allocation2 + $0x38] ss:$0 sps:$4 sm:$0xff]   ;;  %v670_v49 = vrot.slane %v665_v32, 4 }
  0x6f   : > { %1236 = vrot.lane.b32.xlu0 %v3205_v61, %s2787_s22  ;;  %844 = vst.msk [vmem:[#allocation2 + $0xb8] sm:$0xf] %vm259_vm0, %v669_v17  ;;  %v1087_v50 = vshrl.u32 %v3296_v55, 16  ;;  %v683_v53 = vshll.u32 %v412_v14, 16  ;;  %v2730_v30 = vld [vmem:[#allocation2 + $0x98] ss:$0 sps:$4 sm:$0xff]  }
  0x70   : > { %v1185_v54 = vshll.u32 %v3301_v27, 16  ;;  %v678_v57 = vrot.slane %v674_v58, 4  ;;  %v682_v62 = vrot.slane %v680_v23, 7  ;;  %v1091_v19 = vrot.slane %v1089_v48, 1  ;;  %v3349_v31 = vld [vmem:[#allocation2 + $0x3c] sm:$0xff]  }
  0x71   : > { %1252 = vrot.lane.b32.xlu1 %v3211_v25, %s2787_s22  ;;  %v1094_v2 = vshll.u32 %v2729_v46, 16  ;;  %v1183_v7 = vshrl.u32 %v3301_v27, 16  ;;  %v1190_v9 = vshll.u32 %v2730_v30, 16  ;;  %v1275_v22 = vrot.slane %v3296_v55, 1  ;;  %v3354_v32 = vld [vmem:[#allocation2 + $0x9c] sm:$0xff]  }
  0x72   : > { %v789_v42 = vld [vmem:[#allocation2 + $0x5c] sm:$0x1]  ;;  %v1187_v8 = vrot.slane %v1185_v54, 1  ;;  %v1092_v12 = vor.u32 %v1091_v19, %v1087_v50  ;;  %v687_v15 = vrot.slane %v682_v62, 4  ;;  %v1300_v28 = vrot.slane %v2730_v30, 1 }
  0x73   : > { %1315 = vrot.lane.b32.xlu0 %v3123_v47, %s2785_s20  ;;  %v675_v47 = vshll.u32 %v411_v26, 16  ;;  %v790_v56 = vsel %vm2835_vm3, %v534_v44, %v789_v42  ;;  %v845_v59 = vld [vmem:[#allocation2 + $0xbc] sm:$0x1]  ;;  %v1096_v13 = vrot.slane %v1094_v2, 1  ;;  %v1192_v18 = vrot.slane %v1190_v9, 1 }
  0x74   : > { %791 = vst [vmem:[#allocation2 + $0x5c] sm:$0x1] %v790_v56  ;;  %v848_v60 = vld [vmem:[#allocation2 + $0xc0] sm:$0xf]  ;;  %v846_v4 = vsel %vm2835_vm3, %v670_v49, %v845_v59  ;;  %v1276_v26 = vrot.slane %v2729_v46, 1  ;;  %v1099_v1 = vshrl.u32 %v3349_v31, 16 }
  0x75   : > { %1331 = vrot.lane.b32.xlu1 %v3133_v24, %s2785_s20  ;;  %v375_v24 = vld [vmem:[#allocation2 + $0xc8] sm:$0xf]  ;;  %v677_v52 = vor.u32 %v675_v47, %v674_v58  ;;  %847 = vst [vmem:[#allocation2 + $0xbc] sm:$0x1] %v846_v4  ;;  %v1097_v5 = vsel %vm1037_vm9, %v1092_v12, %v1096_v13  ;;  %v321_v33 = vld [vmem:[#allocation2 + $0xcc] sm:$0x1] }
  0x76   : > { %v376_v0 = vsel %vm2843_vm5, 0, %v375_v24  ;;  %v1277_v63 = vsel %vm1262_vm7, %v1275_v22, %v1276_v26  ;;  %v322_v34 = vsel %vm2835_vm3, 0, %v321_v33  ;;  %v2733_v16 = vld [vmem:[#allocation2 + $0x44] ss:$0 sps:$4 sm:$0xff]   ;;  %v378_v36 = vld [vmem:[#allocation2 + $0xd4] sm:$0xf] }
  0x77   : > { %1317 = vrot.lane.b32.xlu0 %v3251_v35, %s2785_s20  ;;  %v849_v6 = vsel %vm2843_vm5, %v677_v52, %v848_v60  ;;  %377 = vst [vmem:[#allocation2 + $0xc8] sm:$0xf] %v376_v0  ;;  %323 = vst [vmem:[#allocation2 + $0xcc] sm:$0x1] %v322_v34  ;;  %v2734_v38 = vld [vmem:[#allocation2 + $0xa4] ss:$0 sps:$4 sm:$0xff]  }
  0x78   : > { %850 = vst [vmem:[#allocation2 + $0xc0] sm:$0xf] %v849_v6  ;;  %v379_v41 = vsel %vm2843_vm5, 0, %v378_v36  ;;  %v1106_v47 = vshll.u32 %v2733_v16, 16  ;;  %v1195_v44 = vshrl.u32 %v3354_v32, 16  ;;  %v1202_v23 = vshll.u32 %v2734_v38, 16 }
  0x79   : > { %1333 = vrot.lane.b32.xlu1 %v3261_v10, %s2785_s20  ;;  %380 = vst [vmem:[#allocation2 + $0xd4] sm:$0xf] %v379_v41  ;;  %v1278_v56 = vrot.slane %v3349_v31, 1  ;;  %v1302_v59 = vrot.slane %v3354_v32, 1  ;;  %v2737_v13 = vld [vmem:[#allocation2 + $0x50] ss:$0 sps:$4 sm:$0xff]  }
  0x7a   : > { %v1108_v48 = vrot.slane %v1106_v47, 1  ;;  %v1204_v24 = vrot.slane %v1202_v23, 1  ;;  %v1118_v22 = vshll.u32 %v2737_v13, 16  ;;  %vm1581_vm11 = vcmask 64512  }
  0x7b   : > { %1352 = vrot.lane.b32.xlu0 %v3112_v43, %s2786_s21  ;;  %v685_v43 = vor.u32 %v683_v53, %v682_v62  ;;  %v1303_v62 = vrot.slane %v2734_v38, 1  ;;  %vm1614_vm12 = vcmask 130048   ;;  %vm1647_vm13 = vcmask 195584  }
  0x7c   : > { %v1120_v34 = vrot.slane %v1118_v22, 1  ;;  %vm1680_vm14 = vcmask 261120   ;;  %vm1713_vm15 = vcmask 326656   ;;  %vm1746_vm1 = vcmask 392192   ;;  %v2754_v22 = vld [vmem:[#allocation2 + $0xc] sm:$0xff]  }
  0x7d   : > { %1368 = vrot.lane.b32.xlu1 %v3135_v51, %s2786_s21  ;;  %v686_v11 = vsel %vm2885_vm8, %v678_v57, %v685_v43  ;;  %v1188_v51 = vor.u32 %v1187_v8, %v1183_v7  ;;  %v1279_v57 = vrot.slane %v2733_v16, 1  ;;  %v3402_v2 = vsel %vm1262_vm7, %v1302_v59, %v1303_v62  ;;  %v3416_v8 = vld [vmem:[#allocation2 + $0x48] sm:$0xff]   ;;  %v3483_v62 = vld [vmem:[#allocation2 + $0xb4] sm:$0xff]  }
  0x7e   : > { %851 = vst.msk [vmem:[#allocation2 + $0xc4] sm:$0xf] %vm259_vm0, %v686_v11  ;;  %v852_v20 = vld [vmem:[#allocation2 + $0xc8] sm:$0x1]  ;;  %v1281_v47 = vrot.slane %v3416_v8, 1  ;;  %vm1779_vm2 = vcmask 457728  }
  0x7f   : > { %1354 = vrot.lane.b32.xlu0 %v3296_v55, %s2786_s21  ;;  %v853_v39 = vsel %vm2835_vm3, %v687_v15, %v852_v20  ;;  %v1193_v21 = vsel %vm1037_vm9, %v1188_v51, %v1192_v18  ;;  %v1280_v0 = vsel %vm1262_vm7, %v1278_v56, %v1279_v57  ;;  %v3421_v11 = vld [vmem:[#allocation2 + $0xa8] sm:$0xff]   ;;  %v1113_v15 = vshll.u32 %v3416_v8, 16  ;;  %v2738_v18 = vld [vmem:[#allocation2 + $0xb0] ss:$0 sps:$4 sm:$0xff]   ;;  %v3477_v56 = vld [vmem:[#allocation2 + $0x60] sm:$0xff]  }
  0x80   : > { %854 = vst [vmem:[#allocation2 + $0xc8] sm:$0x1] %v853_v39  ;;  %v1209_v20 = vshll.u32 %v3421_v11, 16  ;;  %v1111_v39 = vshrl.u32 %v3416_v8, 16  ;;  %v1305_v23 = vrot.slane %v3421_v11, 1  ;;  %vm1812_vm3 = vcmask 523264  }
  0x81   : > { %1370 = vrot.lane.b32.xlu1 %v3301_v27, %s2786_s21  ;;  %vm1881_vm4 = vcmask 588800  }
  0x83   : > { %1399 = vrot.lane.b32.xlu0 %v3205_v61, %s2788_s23  ;;  %v1299_v61 = vrot.slane %v3301_v27, 1 }
  0x85   : > { %1415 = vrot.lane.b32.xlu1 %v3211_v25, %s2788_s23  ;;  %v1301_v25 = vsel %vm1262_vm7, %v1299_v61, %v1300_v28  ;;  %v1207_v61 = vshrl.u32 %v3421_v11, 16  ;;  %v1211_v28 = vrot.slane %v1209_v20, 1  ;;  %v1221_v20 = vshll.u32 %v3483_v62, 16 }
  0x87   : > { %1401 = vrot.lane.b32.xlu0 %v1097_v5, %s2788_s23 }
  0x89   : > { %1417 = vrot.lane.b32.xlu1 %v1193_v21, %s2788_s23 }
  0x8b   : > { %1434 = vrot.lane.b32.xlu0 %v3251_v35, %s2789_s24  ;;  %v1101_v35 = vshll.u32 %v3349_v31, 16 }
  0x8d   : > { %1450 = vrot.lane.b32.xlu1 %v3261_v10, %s2789_s24  ;;  %v1197_v10 = vshll.u32 %v3354_v32, 16  ;;  %v1103_v14 = vrot.slane %v1101_v35, 1  ;;  %v1212_v35 = vor.u32 %v1211_v28, %v1207_v61 }
  0x8f   : > { %1436 = vrot.lane.b32.xlu0 %v1277_v63, %s2789_s24  ;;  %v1199_v58 = vrot.slane %v1197_v10, 1  ;;  %v1104_v46 = vor.u32 %v1103_v14, %v1099_v1 }
  0x91   : > { %1452 = vrot.lane.b32.xlu1 %v1301_v25, %s2789_s24  ;;  %v1200_v49 = vor.u32 %v1199_v58, %v1195_v44  ;;  %v1109_v42 = vsel %vm1037_vm9, %v1104_v46, %v1108_v48  ;;  %v1282_v44 = vrot.slane %v2737_v13, 1  ;;  %v1306_v46 = vrot.slane %v2738_v18, 1  ;;  %v2752_v48 = vld [vmem:[#allocation2] sm:$0xff]  }
  0x93   : > { %1471 = vrot.lane.b32.xlu0 %v3296_v55, %s2790_s29  ;;  %v3369_v17 = vpop.permute.xlu0 %1311  ;;  %v1205_v53 = vsel %vm1037_vm9, %v1200_v49, %v1204_v24 }
  0x95   : > { %1487 = vrot.lane.b32.xlu1 %v3301_v27, %s2790_s29  ;;  %v3374_v3 = vpop.permute.xlu1 %1364 }
  0x97   : > { %1473 = vrot.lane.b32.xlu0 %v3349_v31, %s2790_s29  ;;  %v3379_v50 = vpop.permute.xlu0 %1348 }
  0x99   : > { %1489 = vrot.lane.b32.xlu1 %v3354_v32, %s2790_s29 }
  0x9b   : > { %1518 = vrot.lane.b32.xlu0 %v1097_v5, %s2791_s7  ;;  %v3383_v52 = vpop.permute.xlu1 %1366 }
  0x9d   : > { %1534 = vrot.lane.b32.xlu1 %v1193_v21, %s2791_s7 }
  0x9e   : > { %v3388_v30 = vpop.permute.xlu0 %1350 }
  0x9f   : > { %1520 = vrot.lane.b32.xlu0 %v1109_v42, %s2791_s7 }
  0xa1   : > { %1536 = vrot.lane.b32.xlu1 %v1205_v53, %s2791_s7 }
  0xa2   : > { %v1231_v60 = vpop.permute.xlu0 %1230 }
  0xa3   : > { %1553 = vrot.lane.b32.xlu0 %v1277_v63, %s2792_s8  ;;  %v3391_v54 = vpop.permute.xlu1 %1327  ;;  %v1583_v49 = vsel %vm1581_vm11, %v2752_v48, %v1231_v60 }
  0xa4   : > { %v1616_v60 = vsel %vm1614_vm12, %v1583_v49, %v3369_v17 }
  0xa5   : > { %1569 = vrot.lane.b32.xlu1 %v1301_v25, %s2792_s8  ;;  %v1649_v17 = vsel %vm1647_vm13, %v1616_v60, %v3379_v50 }
  0xa7   : > { %1238 = vrot.lane.b32.xlu0 %v1097_v5, %s2787_s22  ;;  %v3399_v19 = vpop.permute.xlu1 %1329 }
  0xa9   : > { %1254 = vrot.lane.b32.xlu1 %v1193_v21, %s2787_s22  ;;  %v1115_v21 = vrot.slane %v1113_v15, 1  ;;  %v3495_v15 = vld [vmem:[#allocation2 + $0x5c] ss:$0 sps:$4 sm:$0xff]  }
  0xab   : > { %1555 = vrot.lane.b32.xlu0 %v1280_v0, %s2792_s8  ;;  %v1116_v33 = vor.u32 %v1115_v21, %v1111_v39  ;;  %v3505_v21 = vld [vmem:[#allocation2 + $0xbc] ss:$0 sps:$4 sm:$0xff]  }
  0xac   : > { %v1226_v48 = vshll.u32 %v3505_v21, 16 }
  0xad   : > { %1571 = vrot.lane.b32.xlu1 %v3402_v2, %s2792_s8  ;;  %v3407_v4 = vpop.permute.xlu0 %1313  ;;  %v3454_v10 = vsel %vm1037_vm9, %v1116_v33, %v1120_v34 }
  0xaf   : > { %v3409_v6 = vpop.permute.xlu1 %1232  ;;  %1240 = vrot.lane.b32.xlu0 %v1109_v42, %s2787_s22 }
  0xb0   : > { %v1585_v50 = vsel %vm1581_vm11, %v2754_v22, %v3409_v6  ;;  %v1219_v6 = vshrl.u32 %v3483_v62, 16 }
  0xb1   : > { %1256 = vrot.lane.b32.xlu1 %v1205_v53, %s2787_s22  ;;  %v1247_v43 = vpop.permute.xlu0 %1246 }
  0xb2   : > { %v1599_v57 = vsel %vm1581_vm11, %v3477_v56, %v1247_v43 }
  0xb3   : > { %v3413_v7 = vpop.permute.xlu1 %1248  ;;  %1319 = vrot.lane.b32.xlu0 %v1277_v63, %s2785_s20  ;;  %v1214_v63 = vshll.u32 %v2738_v18, 16 }
  0xb5   : > { %1335 = vrot.lane.b32.xlu1 %v1301_v25, %s2785_s20  ;;  %v3419_v9 = vpop.permute.xlu0 %1395  ;;  %v1216_v36 = vrot.slane %v1214_v63, 1 }
  0xb6   : > { %v1682_v39 = vsel %vm1680_vm14, %v1649_v17, %v3419_v9 }
  0xb7   : > { %v3423_v12 = vpop.permute.xlu1 %1411  ;;  %1321 = vrot.lane.b32.xlu0 %v1280_v0, %s2785_s20  ;;  %v3458_v1 = vsel %vm1037_vm9, %v1212_v35, %v1216_v36  ;;  %v1130_v35 = vshll.u32 %v3495_v15, 16  ;;  %v3520_v36 = vld [vmem:[#allocation2 + $0x6c] sm:$0xff]  }
  0xb9   : > { %1337 = vrot.lane.b32.xlu1 %v3402_v2, %s2785_s20  ;;  %v3429_v51 = vpop.permute.xlu0 %1397 }
  0xbb   : > { %v3432_v5 = vpop.permute.xlu1 %1413  ;;  %1356 = vrot.lane.b32.xlu0 %v3349_v31, %s2786_s21 }
  0xbd   : > { %1372 = vrot.lane.b32.xlu1 %v3354_v32, %s2786_s21  ;;  %v3439_v26 = vpop.permute.xlu0 %1430 }
  0xbe   : > { %v1715_v28 = vsel %vm1713_vm15, %v1682_v39, %v3439_v26 }
  0xbf   : > { %v3442_v25 = vpop.permute.xlu1 %1446  ;;  %1358 = vrot.lane.b32.xlu0 %v3416_v8, %s2786_s21 }
  0xc1   : > { %1374 = vrot.lane.b32.xlu1 %v3421_v11, %s2786_s21  ;;  %v3448_v16 = vpop.permute.xlu0 %1432 }
  0xc3   : > { %v3450_v38 = vpop.permute.xlu1 %1448  ;;  %1403 = vrot.lane.b32.xlu0 %v1109_v42, %s2788_s23  ;;  %v3472_v42 = vld [vmem:[#allocation2 + $0x54] sm:$0xff]  }
  0xc4   : > { %v1125_v43 = vshll.u32 %v3472_v42, 16 }
  0xc5   : > { %1419 = vrot.lane.b32.xlu1 %v1205_v53, %s2788_s23  ;;  %v1468_v41 = vpop.permute.xlu0 %1467  ;;  %v3475_v53 = vsel %vm1262_vm7, %v1281_v47, %v1282_v44  ;;  %v1618_v44 = vsel %vm1614_vm12, %v1585_v50, %v3407_v4 }
  0xc6   : > { %v1127_v9 = vrot.slane %v1125_v43, 1  ;;  %v1748_v34 = vsel %vm1746_vm1, %v1715_v28, %v1468_v41  ;;  %v1223_v41 = vrot.slane %v1221_v20, 1  ;;  %v1284_v28 = vrot.slane %v3472_v42, 1 }
  0xc7   : > { %v1484_v14 = vpop.permute.xlu1 %1483  ;;  %1405 = vrot.lane.b32.xlu0 %v3454_v10, %s2788_s23 }
  0xc8   : > { %v1224_v43 = vor.u32 %v1223_v41, %v1219_v6  ;;  %v2748_v41 = vld [vmem:[#allocation2 + $0xc0] sm:$0xff]  }
  0xc9   : > { %1421 = vrot.lane.b32.xlu1 %v3458_v1, %s2788_s23  ;;  %v3465_v58 = vpop.permute.xlu0 %1469 }
  0xcb   : > { %v3469_v24 = vpop.permute.xlu1 %1485  ;;  %1438 = vrot.lane.b32.xlu0 %v1280_v0, %s2789_s24  ;;  %v3488_v0 = vsel %vm1262_vm7, %v1305_v23, %v1306_v46 }
  0xcd   : > { %1454 = vrot.lane.b32.xlu1 %v3402_v2, %s2789_s24  ;;  %v1515_v59 = vpop.permute.xlu0 %1514  ;;  %v1632_v2 = vsel %vm1614_vm12, %v1599_v57, %v3391_v54  ;;  %v1123_v54 = vshrl.u32 %v3472_v42, 16 }
  0xce   : > { %v1665_v61 = vsel %vm1647_vm13, %v1632_v2, %v3374_v3  ;;  %v1601_v3 = vsel %vm1581_vm11, %v3520_v36, %v3413_v7  ;;  %v1781_v47 = vsel %vm1779_vm2, %v1748_v34, %v1515_v59  ;;  %v1132_v59 = vrot.slane %v1130_v35, 1 }
  0xcf   : > { %v1531_v13 = vpop.permute.xlu1 %1530  ;;  %1440 = vrot.lane.b32.xlu0 %v3475_v53, %s2789_s24  ;;  %v1698_v33 = vsel %vm1680_vm14, %v1665_v61, %v3423_v12  ;;  %v1128_v4 = vor.u32 %v1127_v9, %v1123_v54  ;;  %v1228_v2 = vrot.slane %v1226_v48, 1  ;;  %v1309_v34 = vrot.slane %v3505_v21, 1 }
  0xd0   : > { %v1731_v26 = vsel %vm1713_vm15, %v1698_v33, %v3442_v25  ;;  %v1634_v25 = vsel %vm1614_vm12, %v1601_v3, %v3399_v19  ;;  %v1308_v33 = vrot.slane %v3483_v62, 1  ;;  %v1386_v48 = vshll.u32 %v2748_v41, 16 }
  0xd1   : > { %1456 = vrot.lane.b32.xlu1 %v3488_v0, %s2789_s24  ;;  %v1517_v18 = vpop.permute.xlu0 %1516  ;;  %v1764_v23 = vsel %vm1746_vm1, %v1731_v26, %v1484_v14  ;;  %v1651_v14 = vsel %vm1647_vm13, %v1618_v44, %v3388_v30  ;;  %v1667_v19 = vsel %vm1647_vm13, %v1634_v25, %v3383_v52 }
  0xd2   : > { %v1797_v7 = vsel %vm1779_vm2, %v1764_v23, %v1531_v13  ;;  %v1684_v13 = vsel %vm1680_vm14, %v1651_v14, %v3429_v51  ;;  %v1700_v30 = vsel %vm1680_vm14, %v1667_v19, %v3432_v5  ;;  %v1133_v51 = vsel %vm1037_vm9, %v1128_v4, %v1132_v59 }
  0xd3   : > { %v1533_v63 = vpop.permute.xlu1 %1532  ;;  %1475 = vrot.lane.b32.xlu0 %v3416_v8, %s2790_s29  ;;  %v1717_v17 = vsel %vm1713_vm15, %v1684_v13, %v3448_v16  ;;  %v1733_v54 = vsel %vm1713_vm15, %v1700_v30, %v3450_v38  ;;  %v1229_v5 = vsel %vm1037_vm9, %v1224_v43, %v1228_v2  ;;  %v1310_v3 = vsel %vm1262_vm7, %v1308_v33, %v1309_v34  ;;  %v3666_v34 = vld [vmem:[#allocation2 + $0xd4] ss:$0 sps:$4 sm:$0xff]  }
  0xd4   : > { %v1750_v39 = vsel %vm1746_vm1, %v1717_v17, %v3465_v58  ;;  %v1766_v22 = vsel %vm1746_vm1, %v1733_v54, %v3469_v24  ;;  %v1427_v30 = vrot.slane %v2748_v41, 1 }
  0xd5   : > { %1491 = vrot.lane.b32.xlu1 %v3421_v11, %s2790_s29  ;;  %v1550_v12 = vpop.permute.xlu0 %1549  ;;  %v1783_v52 = vsel %vm1779_vm2, %v1750_v39, %v1517_v18  ;;  %v1799_v58 = vsel %vm1779_vm2, %v1766_v22, %v1533_v63  ;;  %v1285_v63 = vrot.slane %v3495_v15, 1  ;;  %v2756_v22 = vld [vmem:[#allocation2 + $0x18] sm:$0xff]  }
  0xd6   : > { %v1814_v46 = vsel %vm1812_vm3, %v1781_v47, %v1550_v12 }
  0xd7   : > { %v1566_v49 = vpop.permute.xlu1 %1565  ;;  %1477 = vrot.lane.b32.xlu0 %v3472_v42, %s2790_s29  ;;  %2634 = vmatprep.mubr.msk.bf16.mxu0 %vm1881_vm4, %v1814_v46  ;;  %v1286_v6 = vsel %vm1262_vm7, %v1284_v28, %v1285_v63  ;;  %v2749_v46 = vld [vmem:[#allocation2 + $0xc8] ss:$0 sps:$4 sm:$0xff]  }
  0xd8   : > { %v1830_v57 = vsel %vm1812_vm3, %v1797_v7, %v1566_v49  ;;  %v1388_v49 = vrot.slane %v1386_v48, 1  ;;  %v1391_v25 = vshll.u32 %v2749_v46, 16  ;;  %v1428_v39 = vrot.slane %v2749_v46, 1 }
  0xd9   : > { %1493 = vrot.lane.b32.xlu1 %v3483_v62, %s2790_s29  ;;  %2650 = vmatprep.mubr.msk.bf16.mxu1 %vm1881_vm4, %v1830_v57  ;;  %v3547_v60 = vpop.permute.xlu0 %1234 }
  0xda   : > { %v1393_v14 = vrot.slane %v1391_v25, 1  ;;  %v2758_v25 = vld [vmem:[#allocation2 + $0x24] sm:$0xff]  }
  0xdb   : > { %v3555_v20 = vpop.permute.xlu1 %1250  ;;  %1522 = vrot.lane.b32.xlu0 %v3454_v10, %s2791_s7 }
  0xdd   : > { %1538 = vrot.lane.b32.xlu1 %v3458_v1, %s2791_s7  ;;  %v1552_v16 = vpop.permute.xlu0 %1551 }
  0xde   : > { %v1816_v50 = vsel %vm1812_vm3, %v1783_v52, %v1552_v16  ;;  %v3648_v52 = vsel %vm1262_vm7, %v1427_v30, %v1428_v39  ;;  %v3650_v16 = vld [vmem:[#allocation2 + $0xcc] sm:$0xff]  }
  0xdf   : > { %v1568_v61 = vpop.permute.xlu1 %1567  ;;  %1524 = vrot.lane.b32.xlu0 %v1133_v51, %s2791_s7  ;;  %2635 = vmatmul.mubr.msk.bf16.vlgmr.msra.gmra.mrb[0].mxu0 %vm1881_vm4, %v1816_v50  ;;  %v1587_v50 = vsel %vm1581_vm11, %v2756_v22, %v3547_v60 }
  0xe0   : > { %v1832_v38 = vsel %vm1812_vm3, %v1799_v58, %v1568_v61  ;;  %v2757_v61 = vld [vmem:[#allocation2 + $0x78] sm:$0xff]  }
  0xe1   : > { %1540 = vrot.lane.b32.xlu1 %v1229_v5, %s2791_s7  ;;  %2651 = vmatmul.mubr.msk.bf16.vlgmr.msra.gmra.mrb[0].mxu1 %vm1881_vm4, %v1832_v38  ;;  %v3579_v18 = vpop.permute.xlu0 %1236  ;;  %v1603_v38 = vsel %vm1581_vm11, %v2757_v61, %v3555_v20 }
  0xe3   : > { %v3581_v24 = vpop.permute.xlu1 %1252  ;;  %1557 = vrot.lane.b32.xlu0 %v3475_v53, %s2792_s8 }
  0xe5   : > { %1573 = vrot.lane.b32.xlu1 %v3488_v0, %s2792_s8  ;;  %v3589_v9 = vpop.permute.xlu0 %1315 }
  0xe6   : > { %v1620_v58 = vsel %vm1614_vm12, %v1587_v50, %v3589_v9 }
  0xe7   : > { %v3593_v35 = vpop.permute.xlu1 %1331  ;;  %1242 = vrot.lane.b32.xlu0 %v3454_v10, %s2787_s22 }
  0xe8   : > { %v1636_v60 = vsel %vm1614_vm12, %v1603_v38, %v3593_v35 }
  0xe9   : > { %1258 = vrot.lane.b32.xlu1 %v3458_v1, %s2787_s22  ;;  %v3600_v15 = vpop.permute.xlu0 %1317 }
  0xeb   : > { %v3603_v26 = vpop.permute.xlu1 %1333  ;;  %1559 = vrot.lane.b32.xlu0 %v1286_v6, %s2792_s8 }
  0xed   : > { %1575 = vrot.lane.b32.xlu1 %v1310_v3, %s2792_s8  ;;  %v1353_v21 = vpop.permute.xlu0 %1352 }
  0xee   : > { %v1653_v28 = vsel %vm1647_vm13, %v1620_v58, %v1353_v21 }
  0xef   : > { %v1369_v47 = vpop.permute.xlu1 %1368  ;;  %1244 = vrot.lane.b32.xlu0 %v1133_v51, %s2787_s22 }
  0xf0   : > { %v1669_v9 = vsel %vm1647_vm13, %v1636_v60, %v1369_v47 }
  0xf1   : > { %1260 = vrot.lane.b32.xlu1 %v1229_v5, %s2787_s22  ;;  %v3609_v10 = vpop.permute.xlu0 %1354  ;;  %s3843_s22 = scalar_lea.vmem %s3974_s3, %s2569_s16 }
  0xf3   : > { %v3611_v12 = vpop.permute.xlu1 %1370  ;;  %1323 = vrot.lane.b32.xlu0 %v3475_v53, %s2785_s20 }
  0xf5   : > { %1339 = vrot.lane.b32.xlu1 %v3488_v0, %s2785_s20  ;;  %v1400_v1 = vpop.permute.xlu0 %1399  ;;  %v1384_v0 = vshrl.u32 %v2748_v41, 16 }
  0xf6   : > { %v1686_v33 = vsel %vm1680_vm14, %v1653_v28, %v1400_v1 }
  0xf7   : > { %v1416_v44 = vpop.permute.xlu1 %1415  ;;  %1325 = vrot.lane.b32.xlu0 %v1286_v6, %s2785_s20  ;;  %v1389_v59 = vor.u32 %v1388_v49, %v1384_v0  ;;  %v1503_v0 = vshrl.u32 %v3650_v16, 16 }
  0xf8   : > { %v1702_v21 = vsel %vm1680_vm14, %v1669_v9, %v1416_v44  ;;  %v1589_v44 = vsel %vm1581_vm11, %v2758_v25, %v3579_v18 }
  0xf9   : > { %1341 = vrot.lane.b32.xlu1 %v1310_v3, %s2785_s20  ;;  %v3619_v23 = vpop.permute.xlu0 %1401  ;;  %v3637_v2 = vsel %vm1037_vm9, %v1389_v59, %v1393_v14 }
  0xfb   : > { %v3621_v7 = vpop.permute.xlu1 %1417  ;;  %1360 = vrot.lane.b32.xlu0 %v3472_v42, %s2786_s21 }
  0xfd   : > { %1376 = vrot.lane.b32.xlu1 %v3483_v62, %s2786_s21  ;;  %v1435_v53 = vpop.permute.xlu0 %1434 }
  0xff   : > { %v1451_v57 = vpop.permute.xlu1 %1450  ;;  %1362 = vrot.lane.b32.xlu0 %v3477_v56, %s2786_s21 }
 0x100   : > { %v1735_v35 = vsel %vm1713_vm15, %v1702_v21, %v1451_v57 }
 0x101   : > { %1378 = vrot.lane.b32.xlu1 %v2748_v41, %s2786_s21  ;;  %v3630_v4 = vpop.permute.xlu0 %1436 }
 0x103   : > { %v3632_v13 = vpop.permute.xlu1 %1452  ;;  %1407 = vrot.lane.b32.xlu0 %v1133_v51, %s2788_s23 }
 0x105   : > { %1423 = vrot.lane.b32.xlu1 %v1229_v5, %s2788_s23  ;;  %v1472_v43 = vpop.permute.xlu0 %1471 }
 0x107   : > { %v1488_v19 = vpop.permute.xlu1 %1487  ;;  %1409 = vrot.lane.b32.xlu0 %v3051_v40, %s2788_s23 }
 0x108   : > { %v1768_v47 = vsel %vm1746_vm1, %v1735_v35, %v1488_v19 }
 0x109   : > { %1425 = vrot.lane.b32.xlu1 %v3637_v2, %s2788_s23  ;;  %v1474_v17 = vpop.permute.xlu0 %1473 }
 0x10b   : > { %v3643_v54 = vpop.permute.xlu1 %1489  ;;  %1442 = vrot.lane.b32.xlu0 %v1286_v6, %s2789_s24  ;;  %v1505_v6 = vshll.u32 %v3650_v16, 16 }
 0x10d   : > { %1458 = vrot.lane.b32.xlu1 %v1310_v3, %s2789_s24  ;;  %v1519_v51 = vpop.permute.xlu0 %1518  ;;  %v1719_v3 = vsel %vm1713_vm15, %v1686_v33, %v1435_v53  ;;  %v1507_v49 = vrot.slane %v1505_v6, 1 }
 0x10e   : > { %v1752_v46 = vsel %vm1746_vm1, %v1719_v3, %v1472_v43  ;;  %v2759_v43 = vld [vmem:[#allocation2 + $0x84] sm:$0xff]  }
 0x10f   : > { %v1535_v5 = vpop.permute.xlu1 %1534  ;;  %1444 = vrot.lane.b32.xlu0 %v2998_v29, %s2789_s24  ;;  %v1785_v1 = vsel %vm1779_vm2, %v1752_v46, %v1519_v51  ;;  %v1605_v19 = vsel %vm1581_vm11, %v2759_v43, %v3581_v24  ;;  %v1508_v39 = vor.u32 %v1507_v49, %v1503_v0 }
 0x110   : > { %v1801_v57 = vsel %vm1779_vm2, %v1768_v47, %v1535_v5  ;;  %v1638_v30 = vsel %vm1614_vm12, %v1605_v19, %v3603_v26 }
 0x111   : > { %1460 = vrot.lane.b32.xlu1 %v3648_v52, %s2789_s24  ;;  %v1521_v63 = vpop.permute.xlu0 %1520  ;;  %v1671_v24 = vsel %vm1647_vm13, %v1638_v30, %v3611_v12 }
 0x112   : > { %v1704_v50 = vsel %vm1680_vm14, %v1671_v24, %v3621_v7 }
 0x113   : > { %v1537_v20 = vpop.permute.xlu1 %1536  ;;  %1479 = vrot.lane.b32.xlu0 %v3477_v56, %s2790_s29  ;;  %v1510_v56 = vshll.u32 %v3666_v34, 16 }
 0x115   : > { %1495 = vrot.lane.b32.xlu1 %v2748_v41, %s2790_s29  ;;  %v1554_v48 = vpop.permute.xlu0 %1553  ;;  %v1622_v41 = vsel %vm1614_vm12, %v1589_v44, %v3600_v15  ;;  %v1512_v51 = vrot.slane %v1510_v56, 1 }
 0x116   : > { %v1818_v53 = vsel %vm1812_vm3, %v1785_v1, %v1554_v48  ;;  %v1655_v18 = vsel %vm1647_vm13, %v1622_v41, %v3609_v10 }
 0x117   : > { %v1570_v59 = vpop.permute.xlu1 %1569  ;;  %1481 = vrot.lane.b32.xlu0 %v3520_v36, %s2790_s29  ;;  %2638 = vmatprep.mubr.msk.bf16.mxu0 %vm1881_vm4, %v1818_v53  ;;  %v1688_v15 = vsel %vm1680_vm14, %v1655_v18, %v3619_v23  ;;  %v1737_v23 = vsel %vm1713_vm15, %v1704_v50, %v3632_v13 }
 0x118   : > { %v1834_v14 = vsel %vm1812_vm3, %v1801_v57, %v1570_v59  ;;  %v1721_v10 = vsel %vm1713_vm15, %v1688_v15, %v3630_v4  ;;  %v1770_v4 = vsel %vm1746_vm1, %v1737_v23, %v3643_v54  ;;  %v1547_v54 = vrot.slane %v3666_v34, 1 }
 0x119   : > { %1497 = vrot.lane.b32.xlu1 %v3650_v16, %s2790_s29  ;;  %2654 = vmatprep.mubr.msk.bf16.mxu1 %vm1881_vm4, %v1834_v14  ;;  %v1239_v36 = vpop.permute.xlu0 %1238  ;;  %v1754_v26 = vsel %vm1746_vm1, %v1721_v10, %v1474_v17  ;;  %v1803_v7 = vsel %vm1779_vm2, %v1770_v4, %v1537_v20  ;;  %v1546_v17 = vrot.slane %v3650_v16, 1 }
 0x11a   : > { %v1787_v5 = vsel %vm1779_vm2, %v1754_v26, %v1521_v63  ;;  %v1591_v49 = vsel %vm1581_vm11, %v3296_v55, %v1239_v36 }
 0x11b   : > { %v1255_v22 = vpop.permute.xlu1 %1254  ;;  %1526 = vrot.lane.b32.xlu0 %v3051_v40, %s2791_s7  ;;  %v1513_v40 = vsel %vm1037_vm9, %v1508_v39, %v1512_v51  ;;  %v1548_v28 = vsel %vm1262_vm7, %v1546_v17, %v1547_v54 }
 0x11c   : > { %v1607_v44 = vsel %vm1581_vm11, %v3301_v27, %v1255_v22 }
 0x11d   : > { %1542 = vrot.lane.b32.xlu1 %v3637_v2, %s2791_s7  ;;  %v1556_v12 = vpop.permute.xlu0 %1555 }
 0x11e   : > { %v1820_v58 = vsel %vm1812_vm3, %v1787_v5, %v1556_v12 }
 0x11f   : > { %v1572_v61 = vpop.permute.xlu1 %1571  ;;  %1528 = vrot.lane.b32.xlu0 %v3060_v45, %s2791_s7  ;;  %2639 = vmatmul.mubr.msk.bf16.gmra.mrb[4].mxu0 %vm1881_vm4, %v1820_v58 }
 0x120   : > { %v1836_v13 = vsel %vm1812_vm3, %v1803_v7, %v1572_v61 }
 0x121   : > { %1544 = vrot.lane.b32.xlu1 %v1513_v40, %s2791_s7  ;;  %2655 = vmatmul.mubr.msk.bf16.gmra.mrb[4].mxu1 %vm1881_vm4, %v1836_v13  ;;  %v1241_v2 = vpop.permute.xlu0 %1240 }
 0x122   : > { %v1593_v24 = vsel %vm1581_vm11, %v3349_v31, %v1241_v2 }
 0x123   : > { %v1257_v38 = vpop.permute.xlu1 %1256  ;;  %1561 = vrot.lane.b32.xlu0 %v2998_v29, %s2792_s8 }
 0x124   : > { %v1609_v23 = vsel %vm1581_vm11, %v3354_v32, %v1257_v38 }
 0x125   : > { %1577 = vrot.lane.b32.xlu1 %v3648_v52, %s2792_s8  ;;  %v1320_v45 = vpop.permute.xlu0 %1319 }
 0x126   : > { %v1624_v25 = vsel %vm1614_vm12, %v1591_v49, %v1320_v45 }
 0x127   : > { %v1336_v63 = vpop.permute.xlu1 %1335  ;;  %1563 = vrot.lane.b32.xlu0 %v3008_v37, %s2792_s8 }
 0x128   : > { %v1640_v41 = vsel %vm1614_vm12, %v1607_v44, %v1336_v63 }
 0x129   : > { %1579 = vrot.lane.b32.xlu1 %v1548_v28, %s2792_s8  ;;  %v1322_v60 = vpop.permute.xlu0 %1321 }
 0x12a   : > { %v1626_v50 = vsel %vm1614_vm12, %v1593_v24, %v1322_v60 }
 0x12b   : > { %v1338_v16 = vpop.permute.xlu1 %1337 }
 0x12c   : > { %v1642_v4 = vsel %vm1614_vm12, %v1609_v23, %v1338_v16 }
 0x12d   : > { %v1357_v33 = vpop.permute.xlu0 %1356 }
 0x12e   : > { %v1657_v57 = vsel %vm1647_vm13, %v1624_v25, %v1357_v33 }
 0x12f   : > { %v1373_v34 = vpop.permute.xlu1 %1372 }
 0x130   : > { %v1673_v43 = vsel %vm1647_vm13, %v1640_v41, %v1373_v34 }
 0x131   : > { %v1359_v6 = vpop.permute.xlu0 %1358 }
 0x132   : > { %v1659_v5 = vsel %vm1647_vm13, %v1626_v50, %v1359_v6 }
 0x133   : > { %v1375_v9 = vpop.permute.xlu1 %1374 }
 0x134   : > { %v1675_v58 = vsel %vm1647_vm13, %v1642_v4, %v1375_v9 }
 0x135   : > { %v1404_v3 = vpop.permute.xlu0 %1403 }
 0x136   : > { %v1690_v14 = vsel %vm1680_vm14, %v1657_v57, %v1404_v3 }
 0x137   : > { %v1420_v29 = vpop.permute.xlu1 %1419 }
 0x138   : > { %v1706_v55 = vsel %vm1680_vm14, %v1673_v43, %v1420_v29 }
 0x139   : > { %v1406_v20 = vpop.permute.xlu0 %1405 }
 0x13a   : > { %v1692_v31 = vsel %vm1680_vm14, %v1659_v5, %v1406_v20 }
 0x13b   : > { %v1422_v21 = vpop.permute.xlu1 %1421 }
 0x13c   : > { %v1708_v61 = vsel %vm1680_vm14, %v1675_v58, %v1422_v21 }
 0x13d   : > { %v1439_v52 = vpop.permute.xlu0 %1438 }
 0x13e   : > { %v1723_v19 = vsel %vm1713_vm15, %v1690_v14, %v1439_v52 }
 0x13f   : > { %v1455_v46 = vpop.permute.xlu1 %1454 }
 0x140   : > { %v1739_v30 = vsel %vm1713_vm15, %v1706_v55, %v1455_v46 }
 0x141   : > { %v1441_v35 = vpop.permute.xlu0 %1440 }
 0x142   : > { %v1725_v40 = vsel %vm1713_vm15, %v1692_v31, %v1441_v35 }
 0x143   : > { %v1457_v1 = vpop.permute.xlu1 %1456 }
 0x144   : > { %v1741_v32 = vsel %vm1713_vm15, %v1708_v61, %v1457_v1 }
 0x145   : > { %v1476_v48 = vpop.permute.xlu0 %1475 }
 0x146   : > { %v1756_v36 = vsel %vm1746_vm1, %v1723_v19, %v1476_v48 }
 0x147   : > { %v1492_v0 = vpop.permute.xlu1 %1491 }
 0x148   : > { %v1772_v39 = vsel %vm1746_vm1, %v1739_v30, %v1492_v0 }
 0x149   : > { %v1478_v47 = vpop.permute.xlu0 %1477 }
 0x14a   : > { %v1758_v13 = vsel %vm1746_vm1, %v1725_v40, %v1478_v47 }
 0x14b   : > { %v1494_v37 = vpop.permute.xlu1 %1493 }
 0x14c   : > { %v1774_v54 = vsel %vm1746_vm1, %v1741_v32, %v1494_v37 }
 0x14d   : > { %v1523_v53 = vpop.permute.xlu0 %1522 }
 0x14e   : > { %v1789_v27 = vsel %vm1779_vm2, %v1756_v36, %v1523_v53 }
 0x14f   : > { %v1539_v56 = vpop.permute.xlu1 %1538 }
 0x150   : > { %v1805_v10 = vsel %vm1779_vm2, %v1772_v39, %v1539_v56 }
 0x151   : > { %v1525_v59 = vpop.permute.xlu0 %1524 }
 0x152   : > { %v1791_v2 = vsel %vm1779_vm2, %v1758_v13, %v1525_v59 }
 0x153   : > { %v1541_v18 = vpop.permute.xlu1 %1540 }
 0x154   : > { %v1807_v45 = vsel %vm1779_vm2, %v1774_v54, %v1541_v18 }
 0x155   : > { %v1558_v15 = vpop.permute.xlu0 %1557 }
 0x156   : > { %v1822_v51 = vsel %vm1812_vm3, %v1789_v27, %v1558_v15 }
 0x157   : > { %v1574_v22 = vpop.permute.xlu1 %1573  ;;  %2642 = vmatprep.mubr.msk.bf16.mxu0 %vm1881_vm4, %v1822_v51 }
 0x158   : > { %v1838_v26 = vsel %vm1812_vm3, %v1805_v10, %v1574_v22 }
 0x159   : > { %2658 = vmatprep.mubr.msk.bf16.mxu1 %vm1881_vm4, %v1838_v26  ;;  %v1243_v12 = vpop.permute.xlu0 %1242 }
 0x15a   : > { %v1595_v57 = vsel %vm1581_vm11, %v3416_v8, %v1243_v12 }
 0x15b   : > { %v1259_v7 = vpop.permute.xlu1 %1258 }
 0x15c   : > { %v1611_v14 = vsel %vm1581_vm11, %v3421_v11, %v1259_v7 }
 0x15d   : > { %v1560_v17 = vpop.permute.xlu0 %1559 }
 0x15e   : > { %v1824_v38 = vsel %vm1812_vm3, %v1791_v2, %v1560_v17 }
 0x15f   : > { %v1576_v28 = vpop.permute.xlu1 %1575  ;;  %2643 = vmatmul.mubr.msk.bf16.gmra.mrb[8].mxu0 %vm1881_vm4, %v1824_v38 }
 0x160   : > { %v1840_v63 = vsel %vm1812_vm3, %v1807_v45, %v1576_v28  ;;  %v3820_v28 = vld [vmem:[%s3973_s2] ss:$0 sm:$0xff] }
 0x161   : > { %2659 = vmatmul.mubr.msk.bf16.gmra.mrb[8].mxu1 %vm1881_vm4, %v1840_v63  ;;  %v1245_v60 = vpop.permute.xlu0 %1244 }
 0x162   : > { %v1597_v36 = vsel %vm1581_vm11, %v3472_v42, %v1245_v60  ;;  %v3825_v60 = vld [vmem:[%s3973_s2 + $0x1] ss:$0 sm:$0xff] }
 0x163   : > { %v1261_v16 = vpop.permute.xlu1 %1260 }
 0x164   : > { %v1613_v51 = vsel %vm1581_vm11, %v3483_v62, %v1261_v16 }
 0x165   : > { %v1324_v33 = vpop.permute.xlu0 %1323 }
 0x166   : > { %v1628_v41 = vsel %vm1614_vm12, %v1595_v57, %v1324_v33 }
 0x167   : > { %v1340_v34 = vpop.permute.xlu1 %1339 }
 0x168   : > { %v1644_v18 = vsel %vm1614_vm12, %v1611_v14, %v1340_v34 }
 0x169   : > { %v1326_v6 = vpop.permute.xlu0 %1325 }
 0x16a   : > { %v1630_v15 = vsel %vm1614_vm12, %v1597_v36, %v1326_v6 }
 0x16b   : > { %v1342_v9 = vpop.permute.xlu1 %1341 }
 0x16c   : > { %v1646_v50 = vsel %vm1614_vm12, %v1613_v51, %v1342_v9 }
 0x16d   : > { %v1361_v3 = vpop.permute.xlu0 %1360 }
 0x16e   : > { %v1661_v43 = vsel %vm1647_vm13, %v1628_v41, %v1361_v3 }
 0x16f   : > { %v1377_v29 = vpop.permute.xlu1 %1376 }
 0x170   : > { %v1677_v30 = vsel %vm1647_vm13, %v1644_v18, %v1377_v29 }
 0x171   : > { %v1363_v20 = vpop.permute.xlu0 %1362 }
 0x172   : > { %v1663_v24 = vsel %vm1647_vm13, %v1630_v15, %v1363_v20 }
 0x173   : > { %v1379_v21 = vpop.permute.xlu1 %1378 }
 0x174   : > { %v1679_v12 = vsel %vm1647_vm13, %v1646_v50, %v1379_v21 }
 0x175   : > { %v1408_v52 = vpop.permute.xlu0 %1407 }
 0x176   : > { %v1694_v55 = vsel %vm1680_vm14, %v1661_v43, %v1408_v52 }
 0x177   : > { %v1424_v46 = vpop.permute.xlu1 %1423 }
 0x178   : > { %v1710_v39 = vsel %vm1680_vm14, %v1677_v30, %v1424_v46 }
 0x179   : > { %v1410_v35 = vpop.permute.xlu0 %1409 }
 0x17a   : > { %v1696_v26 = vsel %vm1680_vm14, %v1663_v24, %v1410_v35 }
 0x17b   : > { %v1426_v1 = vpop.permute.xlu1 %1425 }
 0x17c   : > { %v1712_v58 = vsel %vm1680_vm14, %v1679_v12, %v1426_v1 }
 0x17d   : > { %v1443_v48 = vpop.permute.xlu0 %1442 }
 0x17e   : > { %v1727_v8 = vsel %vm1713_vm15, %v1694_v55, %v1443_v48 }
 0x17f   : > { %v1459_v0 = vpop.permute.xlu1 %1458 }
 0x180   : > { %v1743_v10 = vsel %vm1713_vm15, %v1710_v39, %v1459_v0 }
 0x181   : > { %v1445_v47 = vpop.permute.xlu0 %1444 }
 0x182   : > { %v1729_v4 = vsel %vm1713_vm15, %v1696_v26, %v1445_v47 }
 0x183   : > { %v1461_v37 = vpop.permute.xlu1 %1460 }
 0x184   : > { %v1745_v61 = vsel %vm1713_vm15, %v1712_v58, %v1461_v37 }
 0x185   : > { %v1480_v53 = vpop.permute.xlu0 %1479 }
 0x186   : > { %v1760_v11 = vsel %vm1746_vm1, %v1727_v8, %v1480_v53 }
 0x187   : > { %v1496_v49 = vpop.permute.xlu1 %1495 }
 0x188   : > { %v1776_v23 = vsel %vm1746_vm1, %v1743_v10, %v1496_v49 }
 0x189   : > { %v1482_v56 = vpop.permute.xlu0 %1481 }
 0x18a   : > { %v1762_v40 = vsel %vm1746_vm1, %v1729_v4, %v1482_v56 }
 0x18b   : > { %v1498_v25 = vpop.permute.xlu1 %1497 }
 0x18c   : > { %v1778_v2 = vsel %vm1746_vm1, %v1745_v61, %v1498_v25 }
 0x18d   : > { %v1527_v44 = vpop.permute.xlu0 %1526 }
 0x18e   : > { %v1793_v42 = vsel %vm1779_vm2, %v1760_v11, %v1527_v44 }
 0x18f   : > { %v1543_v59 = vpop.permute.xlu1 %1542 }
 0x190   : > { %v1809_v62 = vsel %vm1779_vm2, %v1776_v23, %v1543_v59 }
 0x191   : > { %v1529_v19 = vpop.permute.xlu0 %1528 }
 0x192   : > { %v1795_v13 = vsel %vm1779_vm2, %v1762_v40, %v1529_v19 }
 0x193   : > { %v1545_v27 = vpop.permute.xlu1 %1544 }
 0x194   : > { %v1811_v54 = vsel %vm1779_vm2, %v1778_v2, %v1545_v27 }
 0x195   : > { %v1562_v22 = vpop.permute.xlu0 %1561 }
 0x196   : > { %v1826_v5 = vsel %vm1812_vm3, %v1793_v42, %v1562_v22 }
 0x197   : > { %v1578_v31 = vpop.permute.xlu1 %1577  ;;  %2646 = vmatprep.mubr.msk.bf16.mxu0 %vm1881_vm4, %v1826_v5 }
 0x198   : > { %v1842_v7 = vsel %vm1812_vm3, %v1809_v62, %v1578_v31 }
 0x199   : > { %2662 = vmatprep.mubr.msk.bf16.mxu1 %vm1881_vm4, %v1842_v7  ;;  %v1564_v32 = vpop.permute.xlu0 %1563 }
 0x19a   : > { %v1828_v17 = vsel %vm1812_vm3, %v1795_v13, %v1564_v32 }
 0x19b   : > { %v1580_v38 = vpop.permute.xlu1 %1579  ;;  %2647 = vmatmul.mubr.msk.bf16.gmra.mrb[12].mxu0 %vm1881_vm4, %v1828_v17 }
 0x19c   : > { %v1844_v45 = vsel %vm1812_vm3, %v1811_v54, %v1580_v38 }
 0x19d   : > { %2663 = vmatmul.mubr.msk.bf16.gmra.mrb[12].mxu1 %vm1881_vm4, %v1844_v45 }
 0x1b2   : > { %v2636_v63 = vpop.f32.mrb[0].mxu0 }
 0x1b3   : > { %v2087_v16 = vmul.f32 %v2636_v63, %v3820_v28  ;;  %v1952_v33 = vpop.f32.mrb[1].mxu0 }
 0x1b4   : > { %v2085_v34 = vmul.f32 %v3820_v28, %v1952_v33  ;;  %v2652_v6 = vpop.f32.mrb[0].mxu1  ;;  %v2637_v9 = vpop.f32.mrb[2].mxu0 }
 0x1b5   : > { %v2123_v3 = vadd.f32 %v3825_v60, %v2087_v16  ;;  %v2103_v29 = vmul.f32 %v2652_v6, %v3820_v28  ;;  %v2088_v20 = vmul.f32 %v2637_v9, %v3820_v28  ;;  %v2016_v21 = vpop.f32.mrb[1].mxu1  ;;  %v1955_v52 = vpop.f32.mrb[3].mxu0 }
 0x1b6   : > { %v2121_v46 = vadd.f32 %v3825_v60, %v2085_v34  ;;  %v2101_v35 = vmul.f32 %v3820_v28, %v2016_v21  ;;  %v2086_v1 = vmul.f32 %v3820_v28, %v1955_v52  ;;  %v2653_v48 = vpop.f32.mrb[2].mxu1 }
 0x1b7   : > { %v2155_v0 = vmax.f32 %v2123_v3, 0.0  ;;  %v2139_v47 = vadd.f32 %v3825_v60, %v2103_v29  ;;  %v2124_v37 = vadd.f32 %v3825_v60, %v2088_v20  ;;  %v2104_v53 = vmul.f32 %v2653_v48, %v3820_v28  ;;  %v2019_v49 = vpop.f32.mrb[3].mxu1 }
 0x1b8   : > { %v2153_v56 = vmax.f32 %v2121_v46, 0.0  ;;  %v2137_v25 = vadd.f32 %v3825_v60, %v2101_v35  ;;  %v2122_v44 = vadd.f32 %v3825_v60, %v2086_v1  ;;  %v2102_v57 = vmul.f32 %v3820_v28, %v2019_v49 }
 0x1b9   : > { %v2573_v59 = vpack.c.bf16 %v2155_v0, %v2155_v0  ;;  %v2171_v41 = vmax.f32 %v2139_v47, 0.0  ;;  %v2156_v14 = vmax.f32 %v2124_v37, 0.0  ;;  %v2140_v43 = vadd.f32 %v3825_v60, %v2104_v53 }
 0x1ba   : > { %v2571_v19 = vpack.c.bf16 %v2153_v56, %v2153_v56  ;;  %v2169_v18 = vmax.f32 %v2137_v25, 0.0  ;;  %v2154_v55 = vmax.f32 %v2122_v44, 0.0  ;;  %v2138_v36 = vadd.f32 %v3825_v60, %v2102_v57 }
 0x1bb   : > { %2315 = vst.msk [vmem:[%s3843_s22 + $0x8] sm:$0xf] %vm259_vm0, %v2573_v59  ;;  %v2589_v30 = vpack.c.bf16 %v2171_v41, %v2171_v41  ;;  %v2574_v8 = vpack.c.bf16 %v2156_v14, %v2156_v14  ;;  %v2172_v27 = vmax.f32 %v2140_v43, 0.0 }
 0x1bc   : > { %2313 = vst.msk [vmem:[%s3843_s22] sm:$0xf] %vm259_vm0, %v2571_v19  ;;  %v2587_v15 = vpack.c.bf16 %v2169_v18, %v2169_v18  ;;  %v2572_v39 = vpack.c.bf16 %v2154_v55, %v2154_v55  ;;  %v2170_v11 = vmax.f32 %v2138_v36, 0.0 }
 0x1bd   : > { %2331 = vst.msk [vmem:[%s3843_s22 + $0x48] sm:$0xf] %vm259_vm0, %v2589_v30  ;;  %2316 = vst.msk [vmem:[%s3843_s22 + $0xc] sm:$0xf] %vm259_vm0, %v2574_v8  ;;  %v2590_v51 = vpack.c.bf16 %v2172_v27, %v2172_v27 }
 0x1be   : > { %2329 = vst.msk [vmem:[%s3843_s22 + $0x40] sm:$0xf] %vm259_vm0, %v2587_v15  ;;  %2314 = vst.msk [vmem:[%s3843_s22 + $0x4] sm:$0xf] %vm259_vm0, %v2572_v39  ;;  %v2588_v24 = vpack.c.bf16 %v2170_v11, %v2170_v11 }
 0x1bf   : > { %2332 = vst.msk [vmem:[%s3843_s22 + $0x4c] sm:$0xf] %vm259_vm0, %v2590_v51 }
 0x1c0   : > { %2330 = vst.msk [vmem:[%s3843_s22 + $0x44] sm:$0xf] %vm259_vm0, %v2588_v24 }
 0x1f2   : > { %v2640_v10 = vpop.f32.mrb[4].mxu0 }
 0x1f3   : > { %v2091_v42 = vmul.f32 %v2640_v10, %v3820_v28  ;;  %v1968_v22 = vpop.f32.mrb[5].mxu0 }
 0x1f4   : > { %v2089_v50 = vmul.f32 %v3820_v28, %v1968_v22  ;;  %v2656_v26 = vpop.f32.mrb[4].mxu1  ;;  %v2641_v23 = vpop.f32.mrb[6].mxu0 }
 0x1f5   : > { %v2127_v5 = vadd.f32 %v3825_v60, %v2091_v42  ;;  %v2107_v12 = vmul.f32 %v2656_v26, %v3820_v28  ;;  %v2092_v4 = vmul.f32 %v2641_v23, %v3820_v28  ;;  %v2032_v62 = vpop.f32.mrb[5].mxu1  ;;  %v1971_v31 = vpop.f32.mrb[7].mxu0 }
 0x1f6   : > { %v2125_v58 = vadd.f32 %v3825_v60, %v2089_v50  ;;  %v2105_v40 = vmul.f32 %v3820_v28, %v2032_v62  ;;  %v2090_v7 = vmul.f32 %v3820_v28, %v1971_v31  ;;  %v2657_v61 = vpop.f32.mrb[6].mxu1 }
 0x1f7   : > { %v2159_v13 = vmax.f32 %v2127_v5, 0.0  ;;  %v2143_v32 = vadd.f32 %v3825_v60, %v2107_v12  ;;  %v2128_v2 = vadd.f32 %v3825_v60, %v2092_v4  ;;  %v2108_v17 = vmul.f32 %v2657_v61, %v3820_v28  ;;  %v2035_v54 = vpop.f32.mrb[7].mxu1 }
 0x1f8   : > { %v2157_v38 = vmax.f32 %v2125_v58, 0.0  ;;  %v2141_v45 = vadd.f32 %v3825_v60, %v2105_v40  ;;  %v2126_v63 = vadd.f32 %v3825_v60, %v2090_v7  ;;  %v2106_v16 = vmul.f32 %v3820_v28, %v2035_v54 }
 0x1f9   : > { %v2577_v33 = vpack.c.bf16 %v2159_v13, %v2159_v13  ;;  %v2175_v34 = vmax.f32 %v2143_v32, 0.0  ;;  %v2160_v6 = vmax.f32 %v2128_v2, 0.0  ;;  %v2144_v9 = vadd.f32 %v3825_v60, %v2108_v17 }
 0x1fa   : > { %v2575_v3 = vpack.c.bf16 %v2157_v38, %v2157_v38  ;;  %v2173_v29 = vmax.f32 %v2141_v45, 0.0  ;;  %v2158_v20 = vmax.f32 %v2126_v63, 0.0  ;;  %v2142_v21 = vadd.f32 %v3825_v60, %v2106_v16 }
 0x1fb   : > { %2319 = vst.msk [vmem:[%s3843_s22 + $0x18] sm:$0xf] %vm259_vm0, %v2577_v33  ;;  %v2593_v52 = vpack.c.bf16 %v2175_v34, %v2175_v34  ;;  %v2578_v46 = vpack.c.bf16 %v2160_v6, %v2160_v6  ;;  %v2176_v35 = vmax.f32 %v2144_v9, 0.0 }
 0x1fc   : > { %2317 = vst.msk [vmem:[%s3843_s22 + $0x10] sm:$0xf] %vm259_vm0, %v2575_v3  ;;  %v2591_v1 = vpack.c.bf16 %v2173_v29, %v2173_v29  ;;  %v2576_v48 = vpack.c.bf16 %v2158_v20, %v2158_v20  ;;  %v2174_v0 = vmax.f32 %v2142_v21, 0.0 }
 0x1fd   : > { %2335 = vst.msk [vmem:[%s3843_s22 + $0x58] sm:$0xf] %vm259_vm0, %v2593_v52  ;;  %2320 = vst.msk [vmem:[%s3843_s22 + $0x1c] sm:$0xf] %vm259_vm0, %v2578_v46  ;;  %v2594_v47 = vpack.c.bf16 %v2176_v35, %v2176_v35 }
 0x1fe   : > { %2333 = vst.msk [vmem:[%s3843_s22 + $0x50] sm:$0xf] %vm259_vm0, %v2591_v1  ;;  %2318 = vst.msk [vmem:[%s3843_s22 + $0x14] sm:$0xf] %vm259_vm0, %v2576_v48  ;;  %v2592_v37 = vpack.c.bf16 %v2174_v0, %v2174_v0 }
 0x1ff   : > { %2336 = vst.msk [vmem:[%s3843_s22 + $0x5c] sm:$0xf] %vm259_vm0, %v2594_v47 }
 0x200   : > { %2334 = vst.msk [vmem:[%s3843_s22 + $0x54] sm:$0xf] %vm259_vm0, %v2592_v37 }
 0x232   : > { %v2644_v53 = vpop.f32.mrb[8].mxu0 }
 0x233   : > { %v2095_v49 = vmul.f32 %v2644_v53, %v3820_v28  ;;  %v1984_v56 = vpop.f32.mrb[9].mxu0 }
 0x234   : > { %v2093_v25 = vmul.f32 %v3820_v28, %v1984_v56  ;;  %v2660_v44 = vpop.f32.mrb[8].mxu1  ;;  %v2645_v57 = vpop.f32.mrb[10].mxu0 }
 0x235   : > { %v2131_v59 = vadd.f32 %v3825_v60, %v2095_v49  ;;  %v2111_v41 = vmul.f32 %v2660_v44, %v3820_v28  ;;  %v2096_v14 = vmul.f32 %v2645_v57, %v3820_v28  ;;  %v2048_v43 = vpop.f32.mrb[9].mxu1  ;;  %v1987_v19 = vpop.f32.mrb[11].mxu0 }
 0x236   : > { %v2129_v18 = vadd.f32 %v3825_v60, %v2093_v25  ;;  %v2109_v55 = vmul.f32 %v3820_v28, %v2048_v43  ;;  %v2094_v36 = vmul.f32 %v3820_v28, %v1987_v19  ;;  %v2661_v30 = vpop.f32.mrb[10].mxu1 }
 0x237   : > { %v2163_v8 = vmax.f32 %v2131_v59, 0.0  ;;  %v2147_v27 = vadd.f32 %v3825_v60, %v2111_v41  ;;  %v2132_v15 = vadd.f32 %v3825_v60, %v2096_v14  ;;  %v2112_v39 = vmul.f32 %v2661_v30, %v3820_v28  ;;  %v2051_v11 = vpop.f32.mrb[11].mxu1 }
 0x238   : > { %v2161_v51 = vmax.f32 %v2129_v18, 0.0  ;;  %v2145_v24 = vadd.f32 %v3825_v60, %v2109_v55  ;;  %v2130_v10 = vadd.f32 %v3825_v60, %v2094_v36  ;;  %v2110_v42 = vmul.f32 %v3820_v28, %v2051_v11 }
 0x239   : > { %v2581_v22 = vpack.c.bf16 %v2163_v8, %v2163_v8  ;;  %v2179_v50 = vmax.f32 %v2147_v27, 0.0  ;;  %v2164_v26 = vmax.f32 %v2132_v15, 0.0  ;;  %v2148_v23 = vadd.f32 %v3825_v60, %v2112_v39 }
 0x23a   : > { %v2579_v5 = vpack.c.bf16 %v2161_v51, %v2161_v51  ;;  %v2177_v12 = vmax.f32 %v2145_v24, 0.0  ;;  %v2162_v4 = vmax.f32 %v2130_v10, 0.0  ;;  %v2146_v62 = vadd.f32 %v3825_v60, %v2110_v42 }
 0x23b   : > { %2323 = vst.msk [vmem:[%s3843_s22 + $0x28] sm:$0xf] %vm259_vm0, %v2581_v22  ;;  %v2597_v31 = vpack.c.bf16 %v2179_v50, %v2179_v50  ;;  %v2582_v58 = vpack.c.bf16 %v2164_v26, %v2164_v26  ;;  %v2180_v40 = vmax.f32 %v2148_v23, 0.0 }
 0x23c   : > { %2321 = vst.msk [vmem:[%s3843_s22 + $0x20] sm:$0xf] %vm259_vm0, %v2579_v5  ;;  %v2595_v7 = vpack.c.bf16 %v2177_v12, %v2177_v12  ;;  %v2580_v61 = vpack.c.bf16 %v2162_v4, %v2162_v4  ;;  %v2178_v13 = vmax.f32 %v2146_v62, 0.0 }
 0x23d   : > { %2339 = vst.msk [vmem:[%s3843_s22 + $0x68] sm:$0xf] %vm259_vm0, %v2597_v31  ;;  %2324 = vst.msk [vmem:[%s3843_s22 + $0x2c] sm:$0xf] %vm259_vm0, %v2582_v58  ;;  %v2598_v32 = vpack.c.bf16 %v2180_v40, %v2180_v40 }
 0x23e   : > { %2337 = vst.msk [vmem:[%s3843_s22 + $0x60] sm:$0xf] %vm259_vm0, %v2595_v7  ;;  %2322 = vst.msk [vmem:[%s3843_s22 + $0x24] sm:$0xf] %vm259_vm0, %v2580_v61  ;;  %v2596_v2 = vpack.c.bf16 %v2178_v13, %v2178_v13 }
 0x23f   : > { %2340 = vst.msk [vmem:[%s3843_s22 + $0x6c] sm:$0xf] %vm259_vm0, %v2598_v32 }
 0x240   : > { %2338 = vst.msk [vmem:[%s3843_s22 + $0x64] sm:$0xf] %vm259_vm0, %v2596_v2 }
 0x26e   : > { %v2648_v17 = vpop.f32.mrb[12].mxu0 }
 0x26f   : > { %v2099_v54 = vmul.f32 %v2648_v17, %v3820_v28  ;;  %v2000_v38 = vpop.f32.mrb[13].mxu0 }
 0x270   : > { %v2097_v45 = vmul.f32 %v3820_v28, %v2000_v38  ;;  %v2664_v63 = vpop.f32.mrb[12].mxu1  ;;  %v2649_v16 = vpop.f32.mrb[14].mxu0 }
 0x271   : > { %v2135_v33 = vadd.f32 %v3825_v60, %v2099_v54  ;;  %v2115_v34 = vmul.f32 %v2664_v63, %v3820_v28  ;;  %v2100_v6 = vmul.f32 %v2649_v16, %v3820_v28  ;;  %v2064_v9 = vpop.f32.mrb[13].mxu1  ;;  %v2003_v3 = vpop.f32.mrb[15].mxu0 }
 0x272   : > { %v2133_v29 = vadd.f32 %v3825_v60, %v2097_v45  ;;  %v2113_v20 = vmul.f32 %v3820_v28, %v2064_v9  ;;  %v2098_v21 = vmul.f32 %v3820_v28, %v2003_v3  ;;  %v2665_v52 = vpop.f32.mrb[14].mxu1 }
 0x273   : > { %v2167_v46 = vmax.f32 %v2135_v33, 0.0  ;;  %v2151_v35 = vadd.f32 %v3825_v60, %v2115_v34  ;;  %v2136_v1 = vadd.f32 %v3825_v60, %v2100_v6  ;;  %v2116_v48 = vmul.f32 %v2665_v52, %v3820_v28  ;;  %v2067_v0 = vpop.f32.mrb[15].mxu1 }
 0x274   : > { %v2165_v47 = vmax.f32 %v2133_v29, 0.0  ;;  %v2149_v37 = vadd.f32 %v3825_v60, %v2113_v20  ;;  %v2134_v53 = vadd.f32 %v3825_v60, %v2098_v21  ;;  %v2114_v49 = vmul.f32 %v3820_v28, %v2067_v0 }
 0x275   : > { %v2585_v56 = vpack.c.bf16 %v2167_v46, %v2167_v46  ;;  %v2183_v25 = vmax.f32 %v2151_v35, 0.0  ;;  %v2168_v44 = vmax.f32 %v2136_v1, 0.0  ;;  %v2152_v57 = vadd.f32 %v3825_v60, %v2116_v48 }
 0x276   : > { %v2583_v59 = vpack.c.bf16 %v2165_v47, %v2165_v47  ;;  %v2181_v41 = vmax.f32 %v2149_v37, 0.0  ;;  %v2166_v14 = vmax.f32 %v2134_v53, 0.0  ;;  %v2150_v43 = vadd.f32 %v3825_v60, %v2114_v49 }
 0x277   : > { %2327 = vst.msk [vmem:[%s3843_s22 + $0x38] sm:$0xf] %vm259_vm0, %v2585_v56  ;;  %v2601_v19 = vpack.c.bf16 %v2183_v25, %v2183_v25  ;;  %v2586_v28 = vpack.c.bf16 %v2168_v44, %v2168_v44  ;;  %v2184_v18 = vmax.f32 %v2152_v57, 0.0 }
 0x278   : > { %2325 = vst.msk [vmem:[%s3843_s22 + $0x30] sm:$0xf] %vm259_vm0, %v2583_v59  ;;  %v2599_v55 = vpack.c.bf16 %v2181_v41, %v2181_v41  ;;  %v2584_v36 = vpack.c.bf16 %v2166_v14, %v2166_v14  ;;  %v2182_v30 = vmax.f32 %v2150_v43, 0.0 }
 0x279   : > { %2343 = vst.msk [vmem:[%s3843_s22 + $0x78] sm:$0xf] %vm259_vm0, %v2601_v19  ;;  %2328 = vst.msk [vmem:[%s3843_s22 + $0x3c] sm:$0xf] %vm259_vm0, %v2586_v28  ;;  %v2602_v8 = vpack.c.bf16 %v2184_v18, %v2184_v18 }
 0x27a   : > { %2341 = vst.msk [vmem:[%s3843_s22 + $0x70] sm:$0xf] %vm259_vm0, %v2599_v55  ;;  %2326 = vst.msk [vmem:[%s3843_s22 + $0x34] sm:$0xf] %vm259_vm0, %v2584_v36  ;;  %v2600_v60 = vpack.c.bf16 %v2182_v30, %v2182_v30 }
 0x27b   : > { %2344 = vst.msk [vmem:[%s3843_s22 + $0x7c] sm:$0xf] %vm259_vm0, %v2602_v8 }
 0x27c   : > { %2342 = vst.msk [vmem:[%s3843_s22 + $0x74] sm:$0xf] %vm259_vm0, %v2600_v60 }
 0x27d PF: > { %s13_s14 = sadd.s32 1, %s2782_s14   ;;  %s3981_s12 = smov %s2778_s13 }
 0x27e   : > { %p10_p5 = scmp.ge.s32.totalorder %s13_s14, 4   ;;  %s3982_s13 = smov %s3984_s15 }
 0x280   :  { %12 = sbr.rel (!%p10_p5) target bundleno = 2 (0x2), region = 74 }

</bundles_post_ra>
